<compile_context>
chip_gen: v5e
topology: v5e:2x2
jax: 0.10.0
libtpu: 0.0.40
codegen_flags: <defaults>
</compile_context>

<pallas_src>
import functools
import math

import jax
import jax.numpy as jnp
from jax.experimental import pallas as pl
from jax.experimental.pallas import tpu as pltpu


def _layernorm(x, g, b, eps=1e-5):
    mu = jnp.mean(x, axis=-1, keepdims=True)
    var = jnp.mean((x - mu) ** 2, axis=-1, keepdims=True)
    return (x - mu) * jax.lax.rsqrt(var + eps) * g + b


def _stage_kernel(xp_ref, mask_ref, h0_ref, c0_ref,
                  w_emb_ref, b_emb_ref,
                  ln1_g_ref, ln1_b_ref, wq_ref, wk_ref, wv_ref, wo_ref,
                  ln2_g_ref, ln2_b_ref, w1_ref, b1_ref, w2_ref, b2_ref,
                  wx_ref, wh_ref, b_lstm_ref,
                  h_out_ref, c_out_ref,
                  x_acc, *, num_blocks):
    blk = pl.program_id(1)

    # ---- patch embedding: only at the first block of each batch element ----
    @pl.when(blk == 0)
    def _():
        xp = xp_ref[0]                                     # (N, P) bf16
        x0 = jnp.dot(xp, w_emb_ref[...],
                     preferred_element_type=jnp.float32) + b_emb_ref[...]
        x_acc[...] = x0 * mask_ref[0]                      # token mask (N, 1)

    x = x_acc[...]                                         # (N, D) f32 residual
    d = x.shape[-1]
    scale = 1.0 / math.sqrt(d)

    # ---- transformer block `blk` (weights streamed per grid step) ---------
    xm = _layernorm(x, ln1_g_ref[0], ln1_b_ref[0]).astype(jnp.bfloat16)
    q = jnp.dot(xm, wq_ref[0], preferred_element_type=jnp.float32)
    k = jnp.dot(xm, wk_ref[0], preferred_element_type=jnp.float32)
    v = jnp.dot(xm, wv_ref[0], preferred_element_type=jnp.float32)

    # q @ k^T via dot_general (no materialized transpose of k).
    # TODO(synk): for large token counts tile this (N, N) softmax flash-style
    # with an extra KV grid axis / online max-sum instead of a dense matrix.
    s = jax.lax.dot_general(
        q.astype(jnp.bfloat16), k.astype(jnp.bfloat16),
        (((1,), (1,)), ((), ())),
        preferred_element_type=jnp.float32) * scale
    s = s - jnp.max(s, axis=-1, keepdims=True)
    p = jnp.exp(s)
    a = p * pl.reciprocal(jnp.sum(p, axis=-1, keepdims=True), approx=True)
    av = jnp.dot(a.astype(jnp.bfloat16), v.astype(jnp.bfloat16),
                 preferred_element_type=jnp.float32)
    attn = jnp.dot(av.astype(jnp.bfloat16), wo_ref[0],
                   preferred_element_type=jnp.float32)
    x = x + attn

    xm2 = _layernorm(x, ln2_g_ref[0], ln2_b_ref[0]).astype(jnp.bfloat16)
    hidden = jax.nn.gelu(
        jnp.dot(xm2, w1_ref[0], preferred_element_type=jnp.float32)
        + b1_ref[0], approximate=True).astype(jnp.bfloat16)
    x = x + jnp.dot(hidden, w2_ref[0],
                    preferred_element_type=jnp.float32) + b2_ref[0]
    x_acc[...] = x

    # ---- token-wise (1x1) LSTM: only at the last block ---------------------
    @pl.when(blk == num_blocks - 1)
    def _():
        xt = x_acc[...].astype(jnp.bfloat16)
        h_prev = h0_ref[0]                                 # (N, D) bf16
        c_prev = c0_ref[0]                                 # (N, D) f32

        # Four lane-aligned (D, D) matmuls — avoids a 4-way lane split at
        # non-128-aligned boundaries.  Gate order: i, f, g, o.
        def gate(idx):
            return (jnp.dot(xt, wx_ref[idx],
                            preferred_element_type=jnp.float32)
                    + jnp.dot(h_prev, wh_ref[idx],
                              preferred_element_type=jnp.float32)
                    + b_lstm_ref[idx])

        i_g = jax.nn.sigmoid(gate(0))
        f_g = jax.nn.sigmoid(gate(1))
        g_g = jnp.tanh(gate(2))
        o_g = jax.nn.sigmoid(gate(3))
        c_new = f_g * c_prev + i_g * g_g
        h_new = o_g * jnp.tanh(c_new)

        # Stage output == LSTM hidden state (single output, no duplicate).
        h_out_ref[0] = h_new.astype(h_out_ref.dtype)
        c_out_ref[0] = c_new


def init_stage_params(key, dim_in, stage_dim, factor, num_blocks):
    p = dim_in * factor * factor
    d = stage_dim
    ks = jax.random.split(key, 9)
    s = 0.02

    def w(k, shape):  # matmul weights stored in bf16 (MXU-native, half DMA)
        return (jax.random.normal(k, shape, jnp.float32) * s).astype(jnp.bfloat16)

    return dict(
        w_emb=w(ks[0], (p, d)),
        b_emb=jnp.zeros((1, d), jnp.float32),
        ln1_g=jnp.ones((num_blocks, 1, d), jnp.float32),
        ln1_b=jnp.zeros((num_blocks, 1, d), jnp.float32),
        wq=w(ks[1], (num_blocks, d, d)),
        wk=w(ks[2], (num_blocks, d, d)),
        wv=w(ks[3], (num_blocks, d, d)),
        wo=w(ks[4], (num_blocks, d, d)),
        ln2_g=jnp.ones((num_blocks, 1, d), jnp.float32),
        ln2_b=jnp.zeros((num_blocks, 1, d), jnp.float32),
        w1=w(ks[5], (num_blocks, d, 4 * d)),
        b1=jnp.zeros((num_blocks, 1, 4 * d), jnp.float32),
        w2=w(ks[6], (num_blocks, 4 * d, d)),
        b2=jnp.zeros((num_blocks, 1, d), jnp.float32),
        # LSTM weights stacked per-gate: (4, D, D) keeps each gate lane-aligned.
        wx=w(ks[7], (4, d, d)),
        wh=w(ks[8], (4, d, d)),
        b_lstm=jnp.zeros((4, 1, d), jnp.float32),
    )


def run_stage(tokens, spatial, params, factor, num_blocks, prev_state=None,
              token_mask=None):
    """tokens: (B, H*W, C) bf16 token layout.  Returns (tokens', spatial', state)."""
    B, _, C = tokens.shape
    H, W = spatial
    Hp, Wp = H // factor, W // factor
    N = Hp * Wp
    P = C * factor * factor
    D = params["w_emb"].shape[1]
    nb = num_blocks

    # Patchify directly from token layout (no NCHW round-trip between stages):
    # im2col of a conv with kernel == stride == factor.
    xp = (tokens.reshape(B, Hp, factor, Wp, factor, C)
          .transpose(0, 1, 3, 2, 4, 5)
          .reshape(B, N, P)).astype(jnp.bfloat16)

    if token_mask is None:
        mask = jnp.ones((B, N, 1), jnp.float32)
    else:
        mask = token_mask.reshape(B, N, 1).astype(jnp.float32)

    if prev_state is None:
        h0 = jnp.zeros((B, N, D), jnp.bfloat16)
        c0 = jnp.zeros((B, N, D), jnp.float32)
    else:
        h0, c0 = prev_state
        h0 = h0.astype(jnp.bfloat16)
        c0 = c0.astype(jnp.float32)

    def per_batch(shape):
        return pl.BlockSpec((1,) + shape,
                            lambda b, k, _s=shape: (b,) + (0,) * len(_s))

    def const(shape):
        return pl.BlockSpec(shape, lambda b, k, _s=shape: (0,) * len(_s))

    def per_block(shape):
        return pl.BlockSpec((1,) + shape,
                            lambda b, k, _s=shape: (k,) + (0,) * len(_s))

    in_specs = [
        per_batch((N, P)),                                # xp
        per_batch((N, 1)),                                # token mask
        per_batch((N, D)),                                # h0
        per_batch((N, D)),                                # c0
        const((P, D)), const((1, D)),                     # patch embed
        per_block((1, D)), per_block((1, D)),             # ln1 g/b
        per_block((D, D)), per_block((D, D)),
        per_block((D, D)), per_block((D, D)),             # wq wk wv wo
        per_block((1, D)), per_block((1, D)),             # ln2 g/b
        per_block((D, 4 * D)), per_block((1, 4 * D)),     # mlp up
        per_block((4 * D, D)), per_block((1, D)),         # mlp down
        const((4, D, D)), const((4, D, D)), const((4, 1, D)),  # lstm
    ]
    out_specs = (per_batch((N, D)), per_batch((N, D)))
    out_shape = (jax.ShapeDtypeStruct((B, N, D), jnp.bfloat16),   # h (stage out)
                 jax.ShapeDtypeStruct((B, N, D), jnp.float32))    # c (cell state)

    kernel = functools.partial(_stage_kernel, num_blocks=nb)
    h_new, c_new = pl.pallas_call(
        kernel,
        grid=(B, nb),
        in_specs=in_specs,
        out_specs=out_specs,
        out_shape=out_shape,
        scratch_shapes=[pltpu.VMEM((N, D), jnp.float32)],   # resident residual
        compiler_params=pltpu.CompilerParams(
            dimension_semantics=("parallel", "arbitrary"),
            vmem_limit_bytes=48 * 1024 * 1024),              # headroom on v7x 64MiB
    )(xp, mask, h0, c0,
      params["w_emb"], params["b_emb"],
      params["ln1_g"], params["ln1_b"],
      params["wq"], params["wk"], params["wv"], params["wo"],
      params["ln2_g"], params["ln2_b"],
      params["w1"], params["b1"], params["w2"], params["b2"],
      params["wx"], params["wh"], params["b_lstm"])

    return h_new, (Hp, Wp), (h_new, c_new)


class MMRTBackbonePallas:
    """JAX/Pallas equivalent of MMRT_Backbone."""

    def __init__(self, config, key):
        embed_dim = config["embed_dim"]
        self.dim_mult = tuple(config["dim_multiplier"])
        self.num_blocks = tuple(config["num_blocks"])
        self.num_stages = len(self.num_blocks)
        self.stage_dims = [embed_dim * m for m in self.dim_mult]
        self.factors = [4 if i == 0 else 2 for i in range(self.num_stages)]
        self.strides = []
        self.params = []
        stride = 1
        dim_in = 3
        keys = jax.random.split(key, self.num_stages)
        for i in range(self.num_stages):
            stride *= self.factors[i]
            self.strides.append(stride)
            self.params.append(
                init_stage_params(keys[i], dim_in, self.stage_dims[i],
                                  self.factors[i], self.num_blocks[i]))
            dim_in = self.stage_dims[i]

    def __call__(self, x_nchw, prev_states=None, token_mask=None):
        if prev_states is None:
            prev_states = [None] * self.num_stages
        B, C, H, W = x_nchw.shape
        # Single NCHW -> token conversion; everything after stays (B, N, D).
        tokens = x_nchw.transpose(0, 2, 3, 1).reshape(B, H * W, C)
        tokens = tokens.astype(jnp.bfloat16)
        spatial = (H, W)

        states = []
        output = {}
        for stage_idx in range(self.num_stages):
            tokens, spatial, state = run_stage(
                tokens, spatial, self.params[stage_idx],
                self.factors[stage_idx], self.num_blocks[stage_idx],
                prev_states[stage_idx],
                token_mask if stage_idx == 0 else None)
            states.append(state)
            Hp, Wp = spatial
            D = tokens.shape[-1]
            # Expose each stage output as an NCHW feature map (PyTorch
            # contract); the inter-stage path itself stays in token layout.
            output[stage_idx] = tokens.reshape(B, Hp, Wp, D).transpose(0, 3, 1, 2)
        return output, states


if __name__ == "__main__":
    # D = 128 / 256 -> lane-aligned channel axis; B = 2 keeps the "parallel"
    # batch axis >= 2 so both v7x TensorCores are used.
    config = dict(embed_dim=128, dim_multiplier=(1, 2), num_blocks=(2, 2),
                  attention_type="full", downsamp_type="patch")
    key = jax.random.PRNGKey(0)
    k_param, k_x = jax.random.split(key)

    model = MMRTBackbonePallas(config, k_param)
    x = jax.random.normal(k_x, (2, 3, 16, 16), jnp.float32)   # NCHW, input_dim=3

    output, states = model(x)
    jax.block_until_ready((output, states))

    for i in range(model.num_stages):
        sp = 16 // model.strides[i]
        assert output[i].shape == (2, model.stage_dims[i], sp, sp)
        assert states[i][0].shape == (2, sp * sp, model.stage_dims[i])
        assert states[i][1].shape == (2, sp * sp, model.stage_dims[i])
        assert bool(jnp.all(jnp.isfinite(output[i].astype(jnp.float32))))

    print("KERNEL_OK")
</pallas_src>

<mosaic_0001>
module attributes {stable_mosaic.version = 11 : i64} {
  func.func @_stage_kernel(%arg0: i32, %arg1: i32, %arg2: memref<1x16x48xbf16, #tpu.memory_space<vmem>>, %arg3: memref<1x16x1xf32, #tpu.memory_space<vmem>>, %arg4: memref<1x16x128xbf16, #tpu.memory_space<vmem>>, %arg5: memref<1x16x128xf32, #tpu.memory_space<vmem>>, %arg6: memref<48x128xbf16, #tpu.memory_space<vmem>>, %arg7: memref<1x128xf32, #tpu.memory_space<vmem>>, %arg8: memref<1x1x128xf32, #tpu.memory_space<vmem>>, %arg9: memref<1x1x128xf32, #tpu.memory_space<vmem>>, %arg10: memref<1x128x128xbf16, #tpu.memory_space<vmem>>, %arg11: memref<1x128x128xbf16, #tpu.memory_space<vmem>>, %arg12: memref<1x128x128xbf16, #tpu.memory_space<vmem>>, %arg13: memref<1x128x128xbf16, #tpu.memory_space<vmem>>, %arg14: memref<1x1x128xf32, #tpu.memory_space<vmem>>, %arg15: memref<1x1x128xf32, #tpu.memory_space<vmem>>, %arg16: memref<1x128x512xbf16, #tpu.memory_space<vmem>>, %arg17: memref<1x1x512xf32, #tpu.memory_space<vmem>>, %arg18: memref<1x512x128xbf16, #tpu.memory_space<vmem>>, %arg19: memref<1x1x128xf32, #tpu.memory_space<vmem>>, %arg20: memref<4x128x128xbf16, #tpu.memory_space<vmem>>, %arg21: memref<4x128x128xbf16, #tpu.memory_space<vmem>>, %arg22: memref<4x1x128xf32, #tpu.memory_space<vmem>>, %arg23: memref<1x16x128xbf16, #tpu.memory_space<vmem>>, %arg24: memref<1x16x128xf32, #tpu.memory_space<vmem>>, %arg25: memref<16x128xf32, #tpu.memory_space<vmem>>) attributes {dimension_semantics = [#tpu.dimension_semantics<parallel>, #tpu.dimension_semantics<arbitrary>], iteration_bounds = array<i64: 2, 2>, scalar_prefetch = 0 : i64, scratch_operands = 1 : i64, tpu.core_type = #tpu.core_type<tc>, window_params = [{transform_indices = @transform_0, window_bounds = array<i64: 1, 16, 48>}, {transform_indices = @transform_1, window_bounds = array<i64: 1, 16, 1>}, {transform_indices = @transform_2, window_bounds = array<i64: 1, 16, 128>}, {transform_indices = @transform_3, window_bounds = array<i64: 1, 16, 128>}, {pipeline_mode = #tpu.pipeline_mode<synchronous>, transform_indices = @transform_4, window_bounds = array<i64: 48, 128>}, {pipeline_mode = #tpu.pipeline_mode<synchronous>, transform_indices = @transform_5, window_bounds = array<i64: 1, 128>}, {transform_indices = @transform_6, window_bounds = array<i64: 1, 1, 128>}, {transform_indices = @transform_7, window_bounds = array<i64: 1, 1, 128>}, {transform_indices = @transform_8, window_bounds = array<i64: 1, 128, 128>}, {transform_indices = @transform_9, window_bounds = array<i64: 1, 128, 128>}, {transform_indices = @transform_10, window_bounds = array<i64: 1, 128, 128>}, {transform_indices = @transform_11, window_bounds = array<i64: 1, 128, 128>}, {transform_indices = @transform_12, window_bounds = array<i64: 1, 1, 128>}, {transform_indices = @transform_13, window_bounds = array<i64: 1, 1, 128>}, {transform_indices = @transform_14, window_bounds = array<i64: 1, 128, 512>}, {transform_indices = @transform_15, window_bounds = array<i64: 1, 1, 512>}, {transform_indices = @transform_16, window_bounds = array<i64: 1, 512, 128>}, {transform_indices = @transform_17, window_bounds = array<i64: 1, 1, 128>}, {pipeline_mode = #tpu.pipeline_mode<synchronous>, transform_indices = @transform_18, window_bounds = array<i64: 4, 128, 128>}, {pipeline_mode = #tpu.pipeline_mode<synchronous>, transform_indices = @transform_19, window_bounds = array<i64: 4, 128, 128>}, {pipeline_mode = #tpu.pipeline_mode<synchronous>, transform_indices = @transform_20, window_bounds = array<i64: 4, 1, 128>}, {transform_indices = @transform_21, window_bounds = array<i64: 1, 16, 128>}, {transform_indices = @transform_22, window_bounds = array<i64: 1, 16, 128>}]} {
    %c0_i32 = arith.constant 0 : i32
    %0 = arith.cmpi eq, %arg1, %c0_i32 : i32
    %1 = arith.extui %0 : i1 to i32
    %c0_i32_0 = arith.constant 0 : i32
    %2 = arith.cmpi ne, %1, %c0_i32_0 : i32
    scf.if %2 {
      %c0_65 = arith.constant 0 : index
      %c0_66 = arith.constant 0 : index
      %c0_67 = arith.constant 0 : index
      %123 = vector.load %arg2[%c0_65, %c0_66, %c0_67] : memref<1x16x48xbf16, #tpu.memory_space<vmem>>, vector<1x16x48xbf16>
      %124 = vector.shape_cast %123 : vector<1x16x48xbf16> to vector<16x48xbf16>
      %c0_68 = arith.constant 0 : index
      %c0_69 = arith.constant 0 : index
      %125 = vector.load %arg6[%c0_68, %c0_69] : memref<48x128xbf16, #tpu.memory_space<vmem>>, vector<48x128xbf16>
      %cst_70 = arith.constant dense<0.000000e+00> : vector<16x128xf32>
      %126 = tpu.matmul %124, %125, %cst_70 {dimension_numbers = #tpu.dot_dimension_numbers<[1], [0], [0], [1], [0, 0, 1, 1], [], []>} : vector<16x48xbf16>, vector<48x128xbf16>, vector<16x128xf32> -> vector<16x128xf32>
      %c0_71 = arith.constant 0 : index
      %c0_72 = arith.constant 0 : index
      %127 = vector.load %arg7[%c0_71, %c0_72] : memref<1x128xf32, #tpu.memory_space<vmem>>, vector<1x128xf32>
      %128 = vector.broadcast %127 : vector<1x128xf32> to vector<16x128xf32>
      %129 = arith.addf %126, %128 : vector<16x128xf32>
      %c0_73 = arith.constant 0 : index
      %c0_74 = arith.constant 0 : index
      %c0_75 = arith.constant 0 : index
      %130 = vector.load %arg3[%c0_73, %c0_74, %c0_75] : memref<1x16x1xf32, #tpu.memory_space<vmem>>, vector<1x16x1xf32>
      %131 = vector.shape_cast %130 : vector<1x16x1xf32> to vector<16x1xf32>
      %132 = vector.broadcast %131 : vector<16x1xf32> to vector<16x128xf32>
      %133 = arith.mulf %129, %132 : vector<16x128xf32>
      %c0_76 = arith.constant 0 : index
      %c0_77 = arith.constant 0 : index
      %134 = vector.load %arg25[%c0_76, %c0_77] : memref<16x128xf32, #tpu.memory_space<vmem>>, vector<16x128xf32>
      tpu.vector_store %arg25[%c0_76, %c0_77], %133 {strides = array<i32>} : memref<16x128xf32, #tpu.memory_space<vmem>>, vector<16x128xf32>,
    } else {
    }
    %c0 = arith.constant 0 : index
    %c0_1 = arith.constant 0 : index
    %3 = vector.load %arg25[%c0, %c0_1] : memref<16x128xf32, #tpu.memory_space<vmem>>, vector<16x128xf32>
    %c0_2 = arith.constant 0 : index
    %c0_3 = arith.constant 0 : index
    %c0_4 = arith.constant 0 : index
    %4 = vector.load %arg8[%c0_2, %c0_3, %c0_4] : memref<1x1x128xf32, #tpu.memory_space<vmem>>, vector<1x1x128xf32>
    %5 = vector.shape_cast %4 : vector<1x1x128xf32> to vector<1x128xf32>
    %c0_5 = arith.constant 0 : index
    %c0_6 = arith.constant 0 : index
    %c0_7 = arith.constant 0 : index
    %6 = vector.load %arg9[%c0_5, %c0_6, %c0_7] : memref<1x1x128xf32, #tpu.memory_space<vmem>>, vector<1x1x128xf32>
    %7 = vector.shape_cast %6 : vector<1x1x128xf32> to vector<1x128xf32>
    %cst = arith.constant dense<0.000000e+00> : vector<16xf32>
    %8 = vector.multi_reduction <add>, %3, %cst [1] : vector<16x128xf32> to vector<16xf32>
    %9 = vector.shape_cast %8 : vector<16xf32> to vector<16x1xf32>
    %cst_8 = arith.constant 1.280000e+02 : f32
    %10 = vector.broadcast %cst_8 : f32 to vector<16x1xf32>
    %11 = arith.divf %9, %10 : vector<16x1xf32>
    %12 = vector.broadcast %11 : vector<16x1xf32> to vector<16x128xf32>
    %13 = arith.subf %3, %12 : vector<16x128xf32>
    %14 = arith.mulf %13, %13 : vector<16x128xf32>
    %cst_9 = arith.constant dense<0.000000e+00> : vector<16xf32>
    %15 = vector.multi_reduction <add>, %14, %cst_9 [1] : vector<16x128xf32> to vector<16xf32>
    %16 = vector.shape_cast %15 : vector<16xf32> to vector<16x1xf32>
    %cst_10 = arith.constant 1.280000e+02 : f32
    %17 = vector.broadcast %cst_10 : f32 to vector<16x1xf32>
    %18 = arith.divf %16, %17 : vector<16x1xf32>
    %19 = vector.broadcast %11 : vector<16x1xf32> to vector<16x128xf32>
    %20 = arith.subf %3, %19 : vector<16x128xf32>
    %cst_11 = arith.constant 9.99999974E-6 : f32
    %21 = vector.broadcast %cst_11 : f32 to vector<16x1xf32>
    %22 = arith.addf %18, %21 : vector<16x1xf32>
    %23 = math.rsqrt %22 : vector<16x1xf32>
    %24 = vector.broadcast %23 : vector<16x1xf32> to vector<16x128xf32>
    %25 = arith.mulf %20, %24 : vector<16x128xf32>
    %26 = vector.broadcast %5 : vector<1x128xf32> to vector<16x128xf32>
    %27 = arith.mulf %25, %26 : vector<16x128xf32>
    %28 = vector.broadcast %7 : vector<1x128xf32> to vector<16x128xf32>
    %29 = arith.addf %27, %28 : vector<16x128xf32>
    %30 = arith.truncf %29 : vector<16x128xf32> to vector<16x128xbf16>
    %c0_12 = arith.constant 0 : index
    %c0_13 = arith.constant 0 : index
    %c0_14 = arith.constant 0 : index
    %31 = vector.load %arg10[%c0_12, %c0_13, %c0_14] : memref<1x128x128xbf16, #tpu.memory_space<vmem>>, vector<1x128x128xbf16>
    %32 = vector.shape_cast %31 : vector<1x128x128xbf16> to vector<128x128xbf16>
    %cst_15 = arith.constant dense<0.000000e+00> : vector<16x128xf32>
    %33 = tpu.matmul %30, %32, %cst_15 {dimension_numbers = #tpu.dot_dimension_numbers<[1], [0], [0], [1], [0, 0, 1, 1], [], []>} : vector<16x128xbf16>, vector<128x128xbf16>, vector<16x128xf32> -> vector<16x128xf32>
    %c0_16 = arith.constant 0 : index
    %c0_17 = arith.constant 0 : index
    %c0_18 = arith.constant 0 : index
    %34 = vector.load %arg11[%c0_16, %c0_17, %c0_18] : memref<1x128x128xbf16, #tpu.memory_space<vmem>>, vector<1x128x128xbf16>
    %35 = vector.shape_cast %34 : vector<1x128x128xbf16> to vector<128x128xbf16>
    %cst_19 = arith.constant dense<0.000000e+00> : vector<16x128xf32>
    %36 = tpu.matmul %30, %35, %cst_19 {dimension_numbers = #tpu.dot_dimension_numbers<[1], [0], [0], [1], [0, 0, 1, 1], [], []>} : vector<16x128xbf16>, vector<128x128xbf16>, vector<16x128xf32> -> vector<16x128xf32>
    %c0_20 = arith.constant 0 : index
    %c0_21 = arith.constant 0 : index
    %c0_22 = arith.constant 0 : index
    %37 = vector.load %arg12[%c0_20, %c0_21, %c0_22] : memref<1x128x128xbf16, #tpu.memory_space<vmem>>, vector<1x128x128xbf16>
    %38 = vector.shape_cast %37 : vector<1x128x128xbf16> to vector<128x128xbf16>
    %cst_23 = arith.constant dense<0.000000e+00> : vector<16x128xf32>
    %39 = tpu.matmul %30, %38, %cst_23 {dimension_numbers = #tpu.dot_dimension_numbers<[1], [0], [0], [1], [0, 0, 1, 1], [], []>} : vector<16x128xbf16>, vector<128x128xbf16>, vector<16x128xf32> -> vector<16x128xf32>
    %40 = arith.truncf %33 : vector<16x128xf32> to vector<16x128xbf16>
    %41 = arith.truncf %36 : vector<16x128xf32> to vector<16x128xbf16>
    %cst_24 = arith.constant dense<0.000000e+00> : vector<16x16xf32>
    %42 = tpu.matmul %40, %41, %cst_24 {dimension_numbers = #tpu.dot_dimension_numbers<[1], [1], [0], [0], [0, 0, 1, 0], [], []>} : vector<16x128xbf16>, vector<16x128xbf16>, vector<16x16xf32> -> vector<16x16xf32>
    %cst_25 = arith.constant 0.0883883461 : f32
    %43 = vector.broadcast %cst_25 : f32 to vector<16x16xf32>
    %44 = arith.mulf %42, %43 : vector<16x16xf32>
    %cst_26 = arith.constant dense<0xFF800000> : vector<16xf32>
    %45 = vector.multi_reduction <maximumf>, %44, %cst_26 [1] : vector<16x16xf32> to vector<16xf32>
    %46 = vector.shape_cast %45 : vector<16xf32> to vector<16x1xf32>
    %47 = vector.broadcast %46 : vector<16x1xf32> to vector<16x16xf32>
    %48 = arith.subf %44, %47 : vector<16x16xf32>
    %49 = math.exp %48 : vector<16x16xf32>
    %cst_27 = arith.constant dense<0.000000e+00> : vector<16xf32>
    %50 = vector.multi_reduction <add>, %49, %cst_27 [1] : vector<16x16xf32> to vector<16xf32>
    %51 = vector.shape_cast %50 : vector<16xf32> to vector<16x1xf32>
    %52 = tpu.reciprocal %51 {approx = true} : vector<16x1xf32> -> vector<16x1xf32>
    %53 = vector.broadcast %52 : vector<16x1xf32> to vector<16x16xf32>
    %54 = arith.mulf %49, %53 : vector<16x16xf32>
    %55 = arith.truncf %54 : vector<16x16xf32> to vector<16x16xbf16>
    %56 = arith.truncf %39 : vector<16x128xf32> to vector<16x128xbf16>
    %cst_28 = arith.constant dense<0.000000e+00> : vector<16x128xf32>
    %57 = tpu.matmul %55, %56, %cst_28 {dimension_numbers = #tpu.dot_dimension_numbers<[1], [0], [0], [1], [0, 0, 1, 1], [], []>} : vector<16x16xbf16>, vector<16x128xbf16>, vector<16x128xf32> -> vector<16x128xf32>
    %58 = arith.truncf %57 : vector<16x128xf32> to vector<16x128xbf16>
    %c0_29 = arith.constant 0 : index
    %c0_30 = arith.constant 0 : index
    %c0_31 = arith.constant 0 : index
    %59 = vector.load %arg13[%c0_29, %c0_30, %c0_31] : memref<1x128x128xbf16, #tpu.memory_space<vmem>>, vector<1x128x128xbf16>
    %60 = vector.shape_cast %59 : vector<1x128x128xbf16> to vector<128x128xbf16>
    %cst_32 = arith.constant dense<0.000000e+00> : vector<16x128xf32>
    %61 = tpu.matmul %58, %60, %cst_32 {dimension_numbers = #tpu.dot_dimension_numbers<[1], [0], [0], [1], [0, 0, 1, 1], [], []>} : vector<16x128xbf16>, vector<128x128xbf16>, vector<16x128xf32> -> vector<16x128xf32>
    %62 = arith.addf %3, %61 : vector<16x128xf32>
    %c0_33 = arith.constant 0 : index
    %c0_34 = arith.constant 0 : index
    %c0_35 = arith.constant 0 : index
    %63 = vector.load %arg14[%c0_33, %c0_34, %c0_35] : memref<1x1x128xf32, #tpu.memory_space<vmem>>, vector<1x1x128xf32>
    %64 = vector.shape_cast %63 : vector<1x1x128xf32> to vector<1x128xf32>
    %c0_36 = arith.constant 0 : index
    %c0_37 = arith.constant 0 : index
    %c0_38 = arith.constant 0 : index
    %65 = vector.load %arg15[%c0_36, %c0_37, %c0_38] : memref<1x1x128xf32, #tpu.memory_space<vmem>>, vector<1x1x128xf32>
    %66 = vector.shape_cast %65 : vector<1x1x128xf32> to vector<1x128xf32>
    %cst_39 = arith.constant dense<0.000000e+00> : vector<16xf32>
    %67 = vector.multi_reduction <add>, %62, %cst_39 [1] : vector<16x128xf32> to vector<16xf32>
    %68 = vector.shape_cast %67 : vector<16xf32> to vector<16x1xf32>
    %cst_40 = arith.constant 1.280000e+02 : f32
    %69 = vector.broadcast %cst_40 : f32 to vector<16x1xf32>
    %70 = arith.divf %68, %69 : vector<16x1xf32>
    %71 = vector.broadcast %70 : vector<16x1xf32> to vector<16x128xf32>
    %72 = arith.subf %62, %71 : vector<16x128xf32>
    %73 = arith.mulf %72, %72 : vector<16x128xf32>
    %cst_41 = arith.constant dense<0.000000e+00> : vector<16xf32>
    %74 = vector.multi_reduction <add>, %73, %cst_41 [1] : vector<16x128xf32> to vector<16xf32>
    %75 = vector.shape_cast %74 : vector<16xf32> to vector<16x1xf32>
    %cst_42 = arith.constant 1.280000e+02 : f32
    %76 = vector.broadcast %cst_42 : f32 to vector<16x1xf32>
    %77 = arith.divf %75, %76 : vector<16x1xf32>
    %78 = vector.broadcast %70 : vector<16x1xf32> to vector<16x128xf32>
    %79 = arith.subf %62, %78 : vector<16x128xf32>
    %cst_43 = arith.constant 9.99999974E-6 : f32
    %80 = vector.broadcast %cst_43 : f32 to vector<16x1xf32>
    %81 = arith.addf %77, %80 : vector<16x1xf32>
    %82 = math.rsqrt %81 : vector<16x1xf32>
    %83 = vector.broadcast %82 : vector<16x1xf32> to vector<16x128xf32>
    %84 = arith.mulf %79, %83 : vector<16x128xf32>
    %85 = vector.broadcast %64 : vector<1x128xf32> to vector<16x128xf32>
    %86 = arith.mulf %84, %85 : vector<16x128xf32>
    %87 = vector.broadcast %66 : vector<1x128xf32> to vector<16x128xf32>
    %88 = arith.addf %86, %87 : vector<16x128xf32>
    %89 = arith.truncf %88 : vector<16x128xf32> to vector<16x128xbf16>
    %c0_44 = arith.constant 0 : index
    %c0_45 = arith.constant 0 : index
    %c0_46 = arith.constant 0 : index
    %90 = vector.load %arg16[%c0_44, %c0_45, %c0_46] : memref<1x128x512xbf16, #tpu.memory_space<vmem>>, vector<1x128x512xbf16>
    %91 = vector.shape_cast %90 : vector<1x128x512xbf16> to vector<128x512xbf16>
    %cst_47 = arith.constant dense<0.000000e+00> : vector<16x512xf32>
    %92 = tpu.matmul %89, %91, %cst_47 {dimension_numbers = #tpu.dot_dimension_numbers<[1], [0], [0], [1], [0, 0, 1, 1], [], []>} : vector<16x128xbf16>, vector<128x512xbf16>, vector<16x512xf32> -> vector<16x512xf32>
    %c0_48 = arith.constant 0 : index
    %c0_49 = arith.constant 0 : index
    %c0_50 = arith.constant 0 : index
    %93 = vector.load %arg17[%c0_48, %c0_49, %c0_50] : memref<1x1x512xf32, #tpu.memory_space<vmem>>, vector<1x1x512xf32>
    %94 = vector.shape_cast %93 : vector<1x1x512xf32> to vector<1x512xf32>
    %95 = vector.broadcast %94 : vector<1x512xf32> to vector<16x512xf32>
    %96 = arith.addf %92, %95 : vector<16x512xf32>
    %97 = arith.mulf %96, %96 : vector<16x512xf32>
    %98 = arith.mulf %96, %97 : vector<16x512xf32>
    %cst_51 = arith.constant 4.471500e-02 : f32
    %99 = vector.broadcast %cst_51 : f32 to vector<16x512xf32>
    %100 = arith.mulf %99, %98 : vector<16x512xf32>
    %101 = arith.addf %96, %100 : vector<16x512xf32>
    %cst_52 = arith.constant 0.797884583 : f32
    %102 = vector.broadcast %cst_52 : f32 to vector<16x512xf32>
    %103 = arith.mulf %102, %101 : vector<16x512xf32>
    %104 = math.tanh %103 : vector<16x512xf32>
    %cst_53 = arith.constant 1.000000e+00 : f32
    %105 = vector.broadcast %cst_53 : f32 to vector<16x512xf32>
    %106 = arith.addf %105, %104 : vector<16x512xf32>
    %cst_54 = arith.constant 5.000000e-01 : f32
    %107 = vector.broadcast %cst_54 : f32 to vector<16x512xf32>
    %108 = arith.mulf %107, %106 : vector<16x512xf32>
    %109 = arith.mulf %96, %108 : vector<16x512xf32>
    %110 = arith.truncf %109 : vector<16x512xf32> to vector<16x512xbf16>
    %c0_55 = arith.constant 0 : index
    %c0_56 = arith.constant 0 : index
    %c0_57 = arith.constant 0 : index
    %111 = vector.load %arg18[%c0_55, %c0_56, %c0_57] : memref<1x512x128xbf16, #tpu.memory_space<vmem>>, vector<1x512x128xbf16>
    %112 = vector.shape_cast %111 : vector<1x512x128xbf16> to vector<512x128xbf16>
    %cst_58 = arith.constant dense<0.000000e+00> : vector<16x128xf32>
    %113 = tpu.matmul %110, %112, %cst_58 {dimension_numbers = #tpu.dot_dimension_numbers<[1], [0], [0], [1], [0, 0, 1, 1], [], []>} : vector<16x512xbf16>, vector<512x128xbf16>, vector<16x128xf32> -> vector<16x128xf32>
    %114 = arith.addf %62, %113 : vector<16x128xf32>
    %c0_59 = arith.constant 0 : index
    %c0_60 = arith.constant 0 : index
    %c0_61 = arith.constant 0 : index
    %115 = vector.load %arg19[%c0_59, %c0_60, %c0_61] : memref<1x1x128xf32, #tpu.memory_space<vmem>>, vector<1x1x128xf32>
    %116 = vector.shape_cast %115 : vector<1x1x128xf32> to vector<1x128xf32>
    %117 = vector.broadcast %116 : vector<1x128xf32> to vector<16x128xf32>
    %118 = arith.addf %114, %117 : vector<16x128xf32>
    %c0_62 = arith.constant 0 : index
    %c0_63 = arith.constant 0 : index
    %119 = vector.load %arg25[%c0_62, %c0_63] : memref<16x128xf32, #tpu.memory_space<vmem>>, vector<16x128xf32>
    tpu.vector_store %arg25[%c0_62, %c0_63], %118 {strides = array<i32>} : memref<16x128xf32, #tpu.memory_space<vmem>>, vector<16x128xf32>,
    %c1_i32 = arith.constant 1 : i32
    %120 = arith.cmpi eq, %arg1, %c1_i32 : i32
    %121 = arith.extui %120 : i1 to i32
    %c0_i32_64 = arith.constant 0 : i32
    %122 = arith.cmpi ne, %121, %c0_i32_64 : i32
    scf.if %122 {
      %c0_65 = arith.constant 0 : index
      %c0_66 = arith.constant 0 : index
      %123 = vector.load %arg25[%c0_65, %c0_66] : memref<16x128xf32, #tpu.memory_space<vmem>>, vector<16x128xf32>
      %124 = arith.truncf %123 : vector<16x128xf32> to vector<16x128xbf16>
      %c0_67 = arith.constant 0 : index
      %c0_68 = arith.constant 0 : index
      %c0_69 = arith.constant 0 : index
      %125 = vector.load %arg4[%c0_67, %c0_68, %c0_69] : memref<1x16x128xbf16, #tpu.memory_space<vmem>>, vector<1x16x128xbf16>
      %126 = vector.shape_cast %125 : vector<1x16x128xbf16> to vector<16x128xbf16>
      %c0_70 = arith.constant 0 : index
      %c0_71 = arith.constant 0 : index
      %c0_72 = arith.constant 0 : index
      %127 = vector.load %arg5[%c0_70, %c0_71, %c0_72] : memref<1x16x128xf32, #tpu.memory_space<vmem>>, vector<1x16x128xf32>
      %128 = vector.shape_cast %127 : vector<1x16x128xf32> to vector<16x128xf32>
      %c0_73 = arith.constant 0 : index
      %c0_74 = arith.constant 0 : index
      %c0_75 = arith.constant 0 : index
      %129 = vector.load %arg20[%c0_73, %c0_74, %c0_75] : memref<4x128x128xbf16, #tpu.memory_space<vmem>>, vector<1x128x128xbf16>
      %130 = vector.shape_cast %129 : vector<1x128x128xbf16> to vector<128x128xbf16>
      %cst_76 = arith.constant dense<0.000000e+00> : vector<16x128xf32>
      %131 = tpu.matmul %124, %130, %cst_76 {dimension_numbers = #tpu.dot_dimension_numbers<[1], [0], [0], [1], [0, 0, 1, 1], [], []>} : vector<16x128xbf16>, vector<128x128xbf16>, vector<16x128xf32> -> vector<16x128xf32>
      %c0_77 = arith.constant 0 : index
      %c0_78 = arith.constant 0 : index
      %c0_79 = arith.constant 0 : index
      %132 = vector.load %arg21[%c0_77, %c0_78, %c0_79] : memref<4x128x128xbf16, #tpu.memory_space<vmem>>, vector<1x128x128xbf16>
      %133 = vector.shape_cast %132 : vector<1x128x128xbf16> to vector<128x128xbf16>
      %cst_80 = arith.constant dense<0.000000e+00> : vector<16x128xf32>
      %134 = tpu.matmul %126, %133, %cst_80 {dimension_numbers = #tpu.dot_dimension_numbers<[1], [0], [0], [1], [0, 0, 1, 1], [], []>} : vector<16x128xbf16>, vector<128x128xbf16>, vector<16x128xf32> -> vector<16x128xf32>
      %135 = arith.addf %131, %134 : vector<16x128xf32>
      %c0_81 = arith.constant 0 : index
      %c0_82 = arith.constant 0 : index
      %c0_83 = arith.constant 0 : index
      %136 = vector.load %arg22[%c0_81, %c0_82, %c0_83] : memref<4x1x128xf32, #tpu.memory_space<vmem>>, vector<1x1x128xf32>
      %137 = vector.shape_cast %136 : vector<1x1x128xf32> to vector<1x128xf32>
      %138 = vector.broadcast %137 : vector<1x128xf32> to vector<16x128xf32>
      %139 = arith.addf %135, %138 : vector<16x128xf32>
      %140 = arith.negf %139 : vector<16x128xf32>
      %141 = math.exp %140 : vector<16x128xf32>
      %cst_84 = arith.constant 1.000000e+00 : f32
      %142 = vector.broadcast %cst_84 : f32 to vector<16x128xf32>
      %143 = arith.addf %142, %141 : vector<16x128xf32>
      %144 = arith.divf %142, %143 : vector<16x128xf32>
      %c1 = arith.constant 1 : index
      %c0_85 = arith.constant 0 : index
      %c0_86 = arith.constant 0 : index
      %145 = vector.load %arg20[%c1, %c0_85, %c0_86] : memref<4x128x128xbf16, #tpu.memory_space<vmem>>, vector<1x128x128xbf16>
      %146 = vector.shape_cast %145 : vector<1x128x128xbf16> to vector<128x128xbf16>
      %cst_87 = arith.constant dense<0.000000e+00> : vector<16x128xf32>
      %147 = tpu.matmul %124, %146, %cst_87 {dimension_numbers = #tpu.dot_dimension_numbers<[1], [0], [0], [1], [0, 0, 1, 1], [], []>} : vector<16x128xbf16>, vector<128x128xbf16>, vector<16x128xf32> -> vector<16x128xf32>
      %c1_88 = arith.constant 1 : index
      %c0_89 = arith.constant 0 : index
      %c0_90 = arith.constant 0 : index
      %148 = vector.load %arg21[%c1_88, %c0_89, %c0_90] : memref<4x128x128xbf16, #tpu.memory_space<vmem>>, vector<1x128x128xbf16>
      %149 = vector.shape_cast %148 : vector<1x128x128xbf16> to vector<128x128xbf16>
      %cst_91 = arith.constant dense<0.000000e+00> : vector<16x128xf32>
      %150 = tpu.matmul %126, %149, %cst_91 {dimension_numbers = #tpu.dot_dimension_numbers<[1], [0], [0], [1], [0, 0, 1, 1], [], []>} : vector<16x128xbf16>, vector<128x128xbf16>, vector<16x128xf32> -> vector<16x128xf32>
      %151 = arith.addf %147, %150 : vector<16x128xf32>
      %c1_92 = arith.constant 1 : index
      %c0_93 = arith.constant 0 : index
      %c0_94 = arith.constant 0 : index
      %152 = vector.load %arg22[%c1_92, %c0_93, %c0_94] : memref<4x1x128xf32, #tpu.memory_space<vmem>>, vector<1x1x128xf32>
      %153 = vector.shape_cast %152 : vector<1x1x128xf32> to vector<1x128xf32>
      %154 = vector.broadcast %153 : vector<1x128xf32> to vector<16x128xf32>
      %155 = arith.addf %151, %154 : vector<16x128xf32>
      %156 = arith.negf %155 : vector<16x128xf32>
      %157 = math.exp %156 : vector<16x128xf32>
      %cst_95 = arith.constant 1.000000e+00 : f32
      %158 = vector.broadcast %cst_95 : f32 to vector<16x128xf32>
      %159 = arith.addf %158, %157 : vector<16x128xf32>
      %160 = arith.divf %158, %159 : vector<16x128xf32>
      %c2 = arith.constant 2 : index
      %c0_96 = arith.constant 0 : index
      %c0_97 = arith.constant 0 : index
      %161 = vector.load %arg20[%c2, %c0_96, %c0_97] : memref<4x128x128xbf16, #tpu.memory_space<vmem>>, vector<1x128x128xbf16>
      %162 = vector.shape_cast %161 : vector<1x128x128xbf16> to vector<128x128xbf16>
      %cst_98 = arith.constant dense<0.000000e+00> : vector<16x128xf32>
      %163 = tpu.matmul %124, %162, %cst_98 {dimension_numbers = #tpu.dot_dimension_numbers<[1], [0], [0], [1], [0, 0, 1, 1], [], []>} : vector<16x128xbf16>, vector<128x128xbf16>, vector<16x128xf32> -> vector<16x128xf32>
      %c2_99 = arith.constant 2 : index
      %c0_100 = arith.constant 0 : index
      %c0_101 = arith.constant 0 : index
      %164 = vector.load %arg21[%c2_99, %c0_100, %c0_101] : memref<4x128x128xbf16, #tpu.memory_space<vmem>>, vector<1x128x128xbf16>
      %165 = vector.shape_cast %164 : vector<1x128x128xbf16> to vector<128x128xbf16>
      %cst_102 = arith.constant dense<0.000000e+00> : vector<16x128xf32>
      %166 = tpu.matmul %126, %165, %cst_102 {dimension_numbers = #tpu.dot_dimension_numbers<[1], [0], [0], [1], [0, 0, 1, 1], [], []>} : vector<16x128xbf16>, vector<128x128xbf16>, vector<16x128xf32> -> vector<16x128xf32>
      %167 = arith.addf %163, %166 : vector<16x128xf32>
      %c2_103 = arith.constant 2 : index
      %c0_104 = arith.constant 0 : index
      %c0_105 = arith.constant 0 : index
      %168 = vector.load %arg22[%c2_103, %c0_104, %c0_105] : memref<4x1x128xf32, #tpu.memory_space<vmem>>, vector<1x1x128xf32>
      %169 = vector.shape_cast %168 : vector<1x1x128xf32> to vector<1x128xf32>
      %170 = vector.broadcast %169 : vector<1x128xf32> to vector<16x128xf32>
      %171 = arith.addf %167, %170 : vector<16x128xf32>
      %172 = math.tanh %171 : vector<16x128xf32>
      %c3 = arith.constant 3 : index
      %c0_106 = arith.constant 0 : index
      %c0_107 = arith.constant 0 : index
      %173 = vector.load %arg20[%c3, %c0_106, %c0_107] : memref<4x128x128xbf16, #tpu.memory_space<vmem>>, vector<1x128x128xbf16>
      %174 = vector.shape_cast %173 : vector<1x128x128xbf16> to vector<128x128xbf16>
      %cst_108 = arith.constant dense<0.000000e+00> : vector<16x128xf32>
      %175 = tpu.matmul %124, %174, %cst_108 {dimension_numbers = #tpu.dot_dimension_numbers<[1], [0], [0], [1], [0, 0, 1, 1], [], []>} : vector<16x128xbf16>, vector<128x128xbf16>, vector<16x128xf32> -> vector<16x128xf32>
      %c3_109 = arith.constant 3 : index
      %c0_110 = arith.constant 0 : index
      %c0_111 = arith.constant 0 : index
      %176 = vector.load %arg21[%c3_109, %c0_110, %c0_111] : memref<4x128x128xbf16, #tpu.memory_space<vmem>>, vector<1x128x128xbf16>
      %177 = vector.shape_cast %176 : vector<1x128x128xbf16> to vector<128x128xbf16>
      %cst_112 = arith.constant dense<0.000000e+00> : vector<16x128xf32>
      %178 = tpu.matmul %126, %177, %cst_112 {dimension_numbers = #tpu.dot_dimension_numbers<[1], [0], [0], [1], [0, 0, 1, 1], [], []>} : vector<16x128xbf16>, vector<128x128xbf16>, vector<16x128xf32> -> vector<16x128xf32>
      %179 = arith.addf %175, %178 : vector<16x128xf32>
      %c3_113 = arith.constant 3 : index
      %c0_114 = arith.constant 0 : index
      %c0_115 = arith.constant 0 : index
      %180 = vector.load %arg22[%c3_113, %c0_114, %c0_115] : memref<4x1x128xf32, #tpu.memory_space<vmem>>, vector<1x1x128xf32>
      %181 = vector.shape_cast %180 : vector<1x1x128xf32> to vector<1x128xf32>
      %182 = vector.broadcast %181 : vector<1x128xf32> to vector<16x128xf32>
      %183 = arith.addf %179, %182 : vector<16x128xf32>
      %184 = arith.negf %183 : vector<16x128xf32>
      %185 = math.exp %184 : vector<16x128xf32>
      %cst_116 = arith.constant 1.000000e+00 : f32
      %186 = vector.broadcast %cst_116 : f32 to vector<16x128xf32>
      %187 = arith.addf %186, %185 : vector<16x128xf32>
      %188 = arith.divf %186, %187 : vector<16x128xf32>
      %189 = arith.mulf %160, %128 : vector<16x128xf32>
      %190 = arith.mulf %144, %172 : vector<16x128xf32>
      %191 = arith.addf %189, %190 : vector<16x128xf32>
      %192 = math.tanh %191 : vector<16x128xf32>
      %193 = arith.mulf %188, %192 : vector<16x128xf32>
      %194 = arith.truncf %193 : vector<16x128xf32> to vector<16x128xbf16>
      %c0_117 = arith.constant 0 : index
      %c0_118 = arith.constant 0 : index
      %c0_119 = arith.constant 0 : index
      %195 = vector.load %arg23[%c0_117, %c0_118, %c0_119] : memref<1x16x128xbf16, #tpu.memory_space<vmem>>, vector<1x16x128xbf16>
      %196 = vector.shape_cast %195 : vector<1x16x128xbf16> to vector<16x128xbf16>
      %197 = vector.shape_cast %194 : vector<16x128xbf16> to vector<1x16x128xbf16>
      tpu.vector_store %arg23[%c0_117, %c0_118, %c0_119], %197 {strides = array<i32>} : memref<1x16x128xbf16, #tpu.memory_space<vmem>>, vector<1x16x128xbf16>,
      %c0_120 = arith.constant 0 : index
      %c0_121 = arith.constant 0 : index
      %c0_122 = arith.constant 0 : index
      %198 = vector.load %arg24[%c0_120, %c0_121, %c0_122] : memref<1x16x128xf32, #tpu.memory_space<vmem>>, vector<1x16x128xf32>
      %199 = vector.shape_cast %198 : vector<1x16x128xf32> to vector<16x128xf32>
      %200 = vector.shape_cast %191 : vector<16x128xf32> to vector<1x16x128xf32>
      tpu.vector_store %arg24[%c0_120, %c0_121, %c0_122], %200 {strides = array<i32>} : memref<1x16x128xf32, #tpu.memory_space<vmem>>, vector<1x16x128xf32>,
    } else {
    }
    return
  }
  func.func @transform_0(%arg0: i32, %arg1: i32) -> (i32, i32, i32) {
    %c0_i32 = arith.constant 0 : i32
    %c0_i32_0 = arith.constant 0 : i32
    %c0_i32_1 = arith.constant 0 : i32
    return %arg0, %c0_i32, %c0_i32_0 : i32, i32, i32
  }
  func.func @transform_1(%arg0: i32, %arg1: i32) -> (i32, i32, i32) {
    %c0_i32 = arith.constant 0 : i32
    %c0_i32_0 = arith.constant 0 : i32
    %c0_i32_1 = arith.constant 0 : i32
    return %arg0, %c0_i32, %c0_i32_0 : i32, i32, i32
  }
  func.func @transform_2(%arg0: i32, %arg1: i32) -> (i32, i32, i32) {
    %c0_i32 = arith.constant 0 : i32
    %c0_i32_0 = arith.constant 0 : i32
    %c0_i32_1 = arith.constant 0 : i32
    return %arg0, %c0_i32, %c0_i32_0 : i32, i32, i32
  }
  func.func @transform_3(%arg0: i32, %arg1: i32) -> (i32, i32, i32) {
    %c0_i32 = arith.constant 0 : i32
    %c0_i32_0 = arith.constant 0 : i32
    %c0_i32_1 = arith.constant 0 : i32
    return %arg0, %c0_i32, %c0_i32_0 : i32, i32, i32
  }
  func.func @transform_4(%arg0: i32, %arg1: i32) -> (i32, i32) {
    %c0_i32 = arith.constant 0 : i32
    %c0_i32_0 = arith.constant 0 : i32
    %c0_i32_1 = arith.constant 0 : i32
    return %c0_i32, %c0_i32_0 : i32, i32
  }
  func.func @transform_5(%arg0: i32, %arg1: i32) -> (i32, i32) {
    %c0_i32 = arith.constant 0 : i32
    %c0_i32_0 = arith.constant 0 : i32
    %c0_i32_1 = arith.constant 0 : i32
    return %c0_i32, %c0_i32_0 : i32, i32
  }
  func.func @transform_6(%arg0: i32, %arg1: i32) -> (i32, i32, i32) {
    %c0_i32 = arith.constant 0 : i32
    %c0_i32_0 = arith.constant 0 : i32
    %c0_i32_1 = arith.constant 0 : i32
    return %arg1, %c0_i32, %c0_i32_0 : i32, i32, i32
  }
  func.func @transform_7(%arg0: i32, %arg1: i32) -> (i32, i32, i32) {
    %c0_i32 = arith.constant 0 : i32
    %c0_i32_0 = arith.constant 0 : i32
    %c0_i32_1 = arith.constant 0 : i32
    return %arg1, %c0_i32, %c0_i32_0 : i32, i32, i32
  }
  func.func @transform_8(%arg0: i32, %arg1: i32) -> (i32, i32, i32) {
    %c0_i32 = arith.constant 0 : i32
    %c0_i32_0 = arith.constant 0 : i32
    %c0_i32_1 = arith.constant 0 : i32
    return %arg1, %c0_i32, %c0_i32_0 : i32, i32, i32
  }
  func.func @transform_9(%arg0: i32, %arg1: i32) -> (i32, i32, i32) {
    %c0_i32 = arith.constant 0 : i32
    %c0_i32_0 = arith.constant 0 : i32
    %c0_i32_1 = arith.constant 0 : i32
    return %arg1, %c0_i32, %c0_i32_0 : i32, i32, i32
  }
  func.func @transform_10(%arg0: i32, %arg1: i32) -> (i32, i32, i32) {
    %c0_i32 = arith.constant 0 : i32
    %c0_i32_0 = arith.constant 0 : i32
    %c0_i32_1 = arith.constant 0 : i32
    return %arg1, %c0_i32, %c0_i32_0 : i32, i32, i32
  }
  func.func @transform_11(%arg0: i32, %arg1: i32) -> (i32, i32, i32) {
    %c0_i32 = arith.constant 0 : i32
    %c0_i32_0 = arith.constant 0 : i32
    %c0_i32_1 = arith.constant 0 : i32
    return %arg1, %c0_i32, %c0_i32_0 : i32, i32, i32
  }
  func.func @transform_12(%arg0: i32, %arg1: i32) -> (i32, i32, i32) {
    %c0_i32 = arith.constant 0 : i32
    %c0_i32_0 = arith.constant 0 : i32
    %c0_i32_1 = arith.constant 0 : i32
    return %arg1, %c0_i32, %c0_i32_0 : i32, i32, i32
  }
  func.func @transform_13(%arg0: i32, %arg1: i32) -> (i32, i32, i32) {
    %c0_i32 = arith.constant 0 : i32
    %c0_i32_0 = arith.constant 0 : i32
    %c0_i32_1 = arith.constant 0 : i32
    return %arg1, %c0_i32, %c0_i32_0 : i32, i32, i32
  }
  func.func @transform_14(%arg0: i32, %arg1: i32) -> (i32, i32, i32) {
    %c0_i32 = arith.constant 0 : i32
    %c0_i32_0 = arith.constant 0 : i32
    %c0_i32_1 = arith.constant 0 : i32
    return %arg1, %c0_i32, %c0_i32_0 : i32, i32, i32
  }
  func.func @transform_15(%arg0: i32, %arg1: i32) -> (i32, i32, i32) {
    %c0_i32 = arith.constant 0 : i32
    %c0_i32_0 = arith.constant 0 : i32
    %c0_i32_1 = arith.constant 0 : i32
    return %arg1, %c0_i32, %c0_i32_0 : i32, i32, i32
  }
  func.func @transform_16(%arg0: i32, %arg1: i32) -> (i32, i32, i32) {
    %c0_i32 = arith.constant 0 : i32
    %c0_i32_0 = arith.constant 0 : i32
    %c0_i32_1 = arith.constant 0 : i32
    return %arg1, %c0_i32, %c0_i32_0 : i32, i32, i32
  }
  func.func @transform_17(%arg0: i32, %arg1: i32) -> (i32, i32, i32) {
    %c0_i32 = arith.constant 0 : i32
    %c0_i32_0 = arith.constant 0 : i32
    %c0_i32_1 = arith.constant 0 : i32
    return %arg1, %c0_i32, %c0_i32_0 : i32, i32, i32
  }
  func.func @transform_18(%arg0: i32, %arg1: i32) -> (i32, i32, i32) {
    %c0_i32 = arith.constant 0 : i32
    %c0_i32_0 = arith.constant 0 : i32
    %c0_i32_1 = arith.constant 0 : i32
    %c0_i32_2 = arith.constant 0 : i32
    return %c0_i32, %c0_i32_0, %c0_i32_1 : i32, i32, i32
  }
  func.func @transform_19(%arg0: i32, %arg1: i32) -> (i32, i32, i32) {
    %c0_i32 = arith.constant 0 : i32
    %c0_i32_0 = arith.constant 0 : i32
    %c0_i32_1 = arith.constant 0 : i32
    %c0_i32_2 = arith.constant 0 : i32
    return %c0_i32, %c0_i32_0, %c0_i32_1 : i32, i32, i32
  }
  func.func @transform_20(%arg0: i32, %arg1: i32) -> (i32, i32, i32) {
    %c0_i32 = arith.constant 0 : i32
    %c0_i32_0 = arith.constant 0 : i32
    %c0_i32_1 = arith.constant 0 : i32
    %c0_i32_2 = arith.constant 0 : i32
    return %c0_i32, %c0_i32_0, %c0_i32_1 : i32, i32, i32
  }
  func.func @transform_21(%arg0: i32, %arg1: i32) -> (i32, i32, i32) {
    %c0_i32 = arith.constant 0 : i32
    %c0_i32_0 = arith.constant 0 : i32
    %c0_i32_1 = arith.constant 0 : i32
    return %arg0, %c0_i32, %c0_i32_0 : i32, i32, i32
  }
  func.func @transform_22(%arg0: i32, %arg1: i32) -> (i32, i32, i32) {
    %c0_i32 = arith.constant 0 : i32
    %c0_i32_0 = arith.constant 0 : i32
    %c0_i32_1 = arith.constant 0 : i32
    return %arg0, %c0_i32, %c0_i32_0 : i32, i32, i32
  }
}

</mosaic_0001>

<bundles_post_ra>
// kernel: tpu_custom_call.1
= control target key start
LH: loop header
LB: loop body
LE: loop exit
PB: predicated region body
PF: predicated region fallthrough
CT: control target
= control target key end

     0   :  { %s6546_s0 = inlined_call_operand.hbm [shape: bf16[2,16,48], index: 0, kind: input, shape index: {}]   ;;  %s6547_s1 = inlined_call_operand.vmem [shape: f32[2,16,1], index: 1, kind: input, shape index: {}]   ;;  %s6548_s2 = inlined_call_operand.hbm [shape: bf16[2,16,128], index: 2, kind: input, shape index: {}]   ;;  %s6549_s3 = inlined_call_operand.vmem [shape: f32[2,16,128], index: 3, kind: input, shape index: {}]   ;;  %s6550_s4 = inlined_call_operand.hbm [shape: bf16[48,128], index: 4, kind: input, shape index: {}]   ;;  %s6551_s5 = inlined_call_operand.hbm [shape: f32[1,128], index: 5, kind: input, shape index: {}]   ;;  %s6552_s6 = inlined_call_operand.hbm [shape: f32[2,1,128], index: 6, kind: input, shape index: {}]   ;;  %s6553_s7 = inlined_call_operand.hbm [shape: f32[2,1,128], index: 7, kind: input, shape index: {}]   ;;  %s6554_s8 = inlined_call_operand.hbm [shape: bf16[2,128,128], index: 8, kind: input, shape index: {}]   ;;  %s6555_s9 = inlined_call_operand.hbm [shape: bf16[2,128,128], index: 9, kind: input, shape index: {}]   ;;  %s6556_s10 = inlined_call_operand.hbm [shape: bf16[2,128,128], index: 10, kind: input, shape index: {}]   ;;  %s6557_s11 = inlined_call_operand.hbm [shape: bf16[2,128,128], index: 11, kind: input, shape index: {}]   ;;  %s6558_s12 = inlined_call_operand.hbm [shape: f32[2,1,128], index: 12, kind: input, shape index: {}]   ;;  %s6559_s13 = inlined_call_operand.vmem [shape: f32[2,1,128], index: 13, kind: input, shape index: {}]   ;;  %s6560_s14 = inlined_call_operand.hbm [shape: bf16[2,128,512], index: 14, kind: input, shape index: {}]   ;;  %s6561_s15 = inlined_call_operand.vmem [shape: f32[2,1,512], index: 15, kind: input, shape index: {}]   ;;  %s6562_s16 = inlined_call_operand.hbm [shape: bf16[2,512,128], index: 16, kind: input, shape index: {}]   ;;  %s6563_s17 = inlined_call_operand.vmem [shape: f32[2,1,128], index: 17, kind: input, shape index: {}]   ;;  %s6564_s18 = inlined_call_operand.hbm [shape: bf16[4,128,128], index: 18, kind: input, shape index: {}]   ;;  %s6565_s19 = inlined_call_operand.hbm [shape: bf16[4,128,128], index: 19, kind: input, shape index: {}]   ;;  %s6566_s20 = inlined_call_operand.vmem [shape: f32[4,1,128], index: 20, kind: input, shape index: {}]   ;;  %s6567_s21 = inlined_call_operand.hbm [shape: bf16[2,16,128], index: 21, kind: output, shape index: {0}]   ;;  %s6568_s22 = inlined_call_operand.hbm [shape: f32[2,16,128], index: 22, kind: output, shape index: {1}]  }
   0x1   :  { %6604 = sst [smem:[#allocation64_spill]] %s6546_s0 }
   0x2   :  { %6605 = sst [smem:[#allocation65_spill]] %s6547_s1 }
   0x3   :  { %6606 = sst [smem:[#allocation66_spill]] %s6548_s2 }
   0x4   :  { %6607 = sst [smem:[#allocation67_spill]] %s6549_s3 }
   0x5   :  { %6608 = sst [smem:[#allocation68_spill]] %s6550_s4 }
   0x6   :  { %6609 = sst [smem:[#allocation69_spill]] %s6551_s5 }
   0x7   :  { %6610 = sst [smem:[#allocation70_spill]] %s6552_s6 }
   0x8   :  { %6611 = sst [smem:[#allocation71_spill]] %s6553_s7 }
   0x9   :  { %6612 = sst [smem:[#allocation72_spill]] %s6554_s8 }
   0xa   :  { %6613 = sst [smem:[#allocation73_spill]] %s6555_s9 }
   0xb   :  { %6614 = sst [smem:[#allocation74_spill]] %s6556_s10 }
   0xc   :  { %6615 = sst [smem:[#allocation75_spill]] %s6557_s11 }
   0xd   :  { %6616 = sst [smem:[#allocation76_spill]] %s6558_s12 }
   0xe   :  { %6617 = sst [smem:[#allocation77_spill]] %s6559_s13 }
   0xf   :  { %6618 = sst [smem:[#allocation78_spill]] %s6560_s14 }
  0x10   :  { %6619 = sst [smem:[#allocation79_spill]] %s6561_s15 }
  0x11   :  { %6620 = sst [smem:[#allocation80_spill]] %s6562_s16 }
  0x12   :  { %6621 = sst [smem:[#allocation81_spill]] %s6563_s17 }
  0x13   :  { %6622 = sst [smem:[#allocation82_spill]] %s6564_s18 }
  0x14   :  { %6623 = sst [smem:[#allocation83_spill]] %s6565_s19 }
  0x15   :  { %6624 = sst [smem:[#allocation84_spill]] %s6566_s20 }
  0x16   :  { %6625 = sst [smem:[#allocation85_spill]] %s6567_s21 }
  0x17   :  { %6626 = sst [smem:[#allocation86_spill]] %s6568_s22 }
  0x18   :  { %28 = vsyncpa [#allocation4], 0 }
  0x19   :  { %30 = vsyncpa [#allocation4 + $0x1], 0 }
  0x1a   :  { %31 = vsyncpa [#allocation7], 0 }
  0x1b   :  { %33 = vsyncpa [#allocation7 + $0x1], 0 }
  0x1c   :  { %34 = vsyncpa [#allocation10], 0 }
  0x1d   :  { %35 = vsyncpa [#allocation5], 0 }
  0x1e   :  { %37 = vsyncpa [#allocation5 + $0x1], 0 }
  0x1f   :  { %38 = vsyncpa [#allocation24], 0 }
  0x20   :  { %40 = vsyncpa [#allocation24 + $0x1], 0  ;;  %s5701_s3 = smov 0   ;;  %s5703_s28 = smov 0  }
  0x21   :  { %s5705_s29 = smov 0   ;;  %s5707_s30 = smov 0  }
  0x22   :  { %s5709_s4 = smov 0   ;;  %s5711_s0 = smov 0  }
  0x23   :  { %s5713_s23 = smov 0   ;;  %s5715_s1 = smov 0  }
  0x24   :  { %s5717_s5 = smov 0   ;;  %s5719_s24 = smov 0  }
  0x25   :  { %s5721_s6 = smov 0  }
  0x26 LB: > { %6627 = sst [smem:[#allocation42_spill]] %s5534_s28  ;;  %s5755_s25 = sadd.s32 4294967295, %s5570_s6   ;;  %s5570_s6 = sphi %s5721_s6, %s46_s6   ;;  %s5566_s24 = sphi %s5719_s24, %s6725_s24   ;;  %s5562_s5 = sphi %s5717_s5, %s6724_s5   ;;  %s5558_s1 = sphi %s5715_s1, %s6723_s1   ;;  %s5554_s23 = sphi %s5713_s23, %s6722_s23   ;;  %s5550_s0 = sphi %s5711_s0, %s6721_s0   ;;  %s5546_s4 = sphi %s5709_s4, %s6720_s4   ;;  %s5542_s30 = sphi %s5707_s30, %s6719_s30   ;;  %s5538_s29 = sphi %s5705_s29, %s6718_s29   ;;  %s5534_s28 = sphi %s5703_s28, %s6717_s28   ;;  %s5530_s3 = sphi %s5701_s3, %s6716_s3  }
  0x27   : > { %6628 = sst [smem:[#allocation43_spill]] %s5538_s29  ;;  %p224_p0 = scmp.ne.s32.totalorder %s5534_s28, %s5530_s3 }
  0x28   : > { %6629 = sst [smem:[#allocation44_spill]] %s5542_s30  ;;  %p79_p1 = scmp.eq.s32.totalorder %s5755_s25, 0 }
  0x29   : > { %6630 = sst [smem:[#allocation45_spill]] %s5546_s4  ;;  %p597_p2 = scmp.eq.s32.totalorder %s5755_s25, 3 }
  0x2a   : > { %6631 = sst [smem:[#allocation46_spill]] %s5550_s0  ;;  %p3712_p3 = scmp.ge.s32.totalorder %s5570_s6, 1 }
  0x2b   : > { %6632 = sst [smem:[#allocation47_spill]] %s5554_s23  ;;  %p636_p4 = scmp.lt.s32.totalorder %s5570_s6, 5 }
  0x2c   : > { %6633 = sst [smem:[#allocation48_spill]] %s5558_s1  ;;  %p5764_p5 = por %p224_p0, %p79_p1 }
  0x2d   : > { %6634 = sst [smem:[#allocation49_spill]] %s5562_s5  ;;  %p5768_p6 = pnand %p3712_p3, %p636_p4 }
  0x2e   : > { %6635 = sst [smem:[#allocation50_spill]] %s5566_s24  ;;  %s5572_s3 = smov [#allocation8]  }
  0x2f   : > { %6636 = sst [smem:[#allocation51_spill]] %s5570_s6  ;;  %p4667_p7 = pneg %p5768_p6 }
  0x30   : > { %6637 = sst [smem:[#allocation52_spill]] %s5755_s25  ;;  %s649_s17 = sshll.u32 %s5572_s3, 4  ;;  %s650_s17 = int_to_ptr.vmem [resolvable:$true] %s649_s17 }
  0x31   : > { %s6638_s26 = scalar_select %p5764_p5, 1, 0 }
  0x32   : > { %s6640_s2 = scalar_select %p5768_p6, 1, 0 }
  0x33   : > { %6639 = sst [smem:[#allocation53_spill]] %s6638_s26  ;;  %p5779_p8 = pnand %p4667_p7, %p79_p1 }
  0x34   : > { %6641 = sst [smem:[#allocation54_spill]] %s6640_s2  ;;  %s6578_s13 = smov 64  }
  0x35   : > { %s6642_s21 = sld [smem:[#allocation68_spill]]  ;;  %s6580_s3 = smov 4  }
  0x36   : > { %s6644_s18 = sld [smem:[#allocation82_spill]]  ;;  %s5575_s23 = smov [#allocation20]  }
  0x37   : > { %s675_s1 = sshll.u32 %s5575_s23, 4  ;;  %s3711_s22 = sadd.s32 4294967294, %s5570_s6   ;;  %s676_s1 = int_to_ptr.vmem [resolvable:$true] %s675_s1 }
  0x38   : > { %s55_s27 = sadd.s32 1, %s5562_s5  ;;  %s65_s26 = sadd.s32 1, %s5550_s0 }
  0x39   : > { %p56_p9 = scmp.ge.s32.totalorder %s55_s27, 2  ;;  %p72_p10 = scmp.ne.s32.totalorder %s5550_s0, %s5546_s4 }
  0x3a   : > { %p6577_p11 = scmp.eq.s32.totalorder %s5570_s6, 0  ;;  %p78_p13 = scmp.ne.s32.totalorder %s5546_s4, %s5542_s30 }
  0x3b   : > { %s647_s20 = sshll.u32 %s6642_s21, 4  ;;  %s6727_s27 = smov (%p56_p9, %s55_s27), 0  ;;  %s648_s20 = int_to_ptr.hbm [resolvable:$true] %s647_s20 }
  0x3c   : > { %s673_s21 = sshll.u32 %s6644_s18, 4  ;;  %s58_s18 = sadd.s32 1, %s5566_s24  ;;  %s674_s21 = int_to_ptr.hbm [resolvable:$true] %s673_s21 }
  0x3d   : > { %4670 = dma.hbm_to_vmem [thread:$0]  (!%p5779_p8), %s648_s20, 384, %s650_s17, [#allocation7], %s6578_s13, %s6578_s13, %s6580_s3  }
  0x3e   : > { %4676 = dma.hbm_to_vmem [thread:$0]  (!%p5779_p8), %s674_s21, 4096, %s676_s1, [#allocation7], %s6578_s13, %s6578_s13, %s6580_s3  }
  0x3f   : > { %6645 = sst [smem:[#allocation55_spill]] %s6727_s27  ;;  %s6729_s18 = smov (!%p56_p9, %s58_s18), %s5566_s24 }
  0x40   : > { %p5808_p12 = por %p6577_p11, %p72_p10  ;;  %p60_p0 = scmp.ge.s32.totalorder %s6729_s18, 2 }
  0x41   : > { %p5816_p3 = por %p597_p2, %p72_p10  ;;  %p5822_p4 = por %p79_p1, %p78_p13 }
  0x42   : > { %p603_p7 = scmp.eq.s32.totalorder %s3711_s22, 3  ;;  %s6731_s18 = smov (%p60_p0, %s6729_s18), 0 }
  0x43   : > { %s6647_s20 = scalar_select %p5816_p3, 1, 0 }
  0x44   : > { %s6649_s23 = scalar_select %p5822_p4, 1, 0 }
  0x45   : > { %6648 = sst [smem:[#allocation56_spill]] %s6647_s20  ;;  %p5828_p9 = por %p603_p7, %p78_p13 }
  0x46   : > { %6650 = sst [smem:[#allocation57_spill]] %s6649_s23  ;;  %p4725_p11 = scmp.lt.s32.totalorder %s5570_s6, 4 }
  0x47   : > { %6651 = sst [smem:[#allocation58_spill]] %s6731_s18  ;;  %s62_s21 = ssub.s32 %s5566_s24, %s6731_s18 }
  0x48   : > { %s6652_s1 = scalar_select %p5828_p9, 1, 0 }
  0x49   : > { %s706_s13 = sand.u32 1, %s5570_s6   ;;  %p63_p2 = scmp.eq.s32.totalorder %s62_s21, 0 }
  0x4a   : > { %6653 = sst [smem:[#allocation59_spill]] %s6652_s1  ;;  %s708_s3 = sand.u32 1, %s5550_s0  }
  0x4b   : > { %s4443_s30 = sshll.u32 %s5566_s24, 3  ;;  %s3718_s4 = sshll.u32 %s708_s3, 3 }
  0x4c   : > { %s5839_s20 = scalar_select %p63_p2, %s5550_s0, %s65_s26  }
  0x4d   : > { %s6655_s25 = sld [smem:[#allocation64_spill]]  ;;  %s710_s14 = scalar_lea.vmem [#allocation3], %s3718_s4 }
  0x4e   : > { %6654 = sst [smem:[#allocation60_spill]] %s5839_s20  ;;  %s718_s1 = sshll.u32 %s710_s14, 4  ;;  %s719_s1 = int_to_ptr.vmem [resolvable:$true] %s718_s1 }
  0x4f   : > { %p4681_p10 = pnand %p4725_p11, %p5808_p12  ;;  %s6656_s21 = sld [smem:[#allocation66_spill]] }
  0x50   : > { %s6658_s22 = smov 64   ;;  %s740_s18 = scalar_lea.vmem [#allocation6], %s3718_s4 }
  0x51   : > { %s748_s17 = sshll.u32 %s740_s18, 4  ;;  %s5857_s24 = scalar_lea.sflag [#allocation7], %s706_s13  ;;  %s749_s17 = int_to_ptr.vmem [resolvable:$true] %s748_s17 }
  0x52   : > { %s211_s26 = sadd.s32 1, %s5538_s29  ;;  %p218_p13 = scmp.ne.s32.totalorder %s5538_s29, %s5534_s28 }
  0x53   : > { %s715_s2 = scalar_lea.hbm %s6655_s25, %s4443_s30  ;;  %s5851_s25 = scalar_lea.sflag [#allocation4], %s706_s13 }
  0x54   : > { %s716_s16 = sshll.u32 %s715_s2, 4  ;;  %s6657_s2 = smov 4   ;;  %s717_s16 = int_to_ptr.hbm [resolvable:$true] %s716_s16 }
  0x55   : > { %s745_s23 = scalar_lea.hbm %s6656_s21, %s4443_s30  ;;  %s208_s30 = ssub.s32 %s5562_s5, %s6727_s27 }
  0x56   : > { %4683 = dma.hbm_to_vmem [thread:$0]  (!%p4681_p10), %s717_s16, 128, %s719_s1, %s5851_s25, %s6658_s22, %s6658_s22, %s6657_s2  }
  0x57   : > { %s746_s14 = sshll.u32 %s745_s23, 4  ;;  %p209_p12 = scmp.eq.s32.totalorder %s208_s30, 0  ;;  %s747_s14 = int_to_ptr.hbm [resolvable:$true] %s746_s14 }
  0x58   : > { %4686 = dma.hbm_to_vmem [thread:$0]  (!%p4681_p10), %s747_s14, 128, %s749_s17, %s5857_s24, %s6658_s22, %s6658_s22, %s6657_s2  }
  0x59   : > { %s5869_s16 = scalar_select %p209_p12, %s5538_s29, %s211_s26  }
  0x5a   : > { %p6660_p0 = scmp.eq.s32.totalorder %s5570_s6, 0  ;;  %s5874_s18 = sand.u32 1, %s5538_s29  }
  0x5b   : > { %6659 = sst [smem:[#allocation61_spill]] %s5869_s16  ;;  %s769_s23 = scalar_lea.vmem [#allocation11], %s5874_s18 }
  0x5c   : > { %p220_p7 = por %p218_p13, %p6660_p0  ;;  %s6661_s1 = sld [smem:[#allocation70_spill]] }
  0x5d   : > { %s776_s14 = sshll.u32 %s769_s23, 4  ;;  %s6663_s7 = sld [smem:[#allocation71_spill]]  ;;  %s777_s14 = int_to_ptr.vmem [resolvable:$true] %s776_s14 }
  0x5e   : > { %p5883_p2 = pnand %p4725_p11, %p220_p7  ;;  %s786_s4 = scalar_lea.vmem [#allocation12], %s5874_s18 }
  0x5f   : > { %s5899_s23 = sshll.u32 %s5874_s18, 6  ;;  %s5902_s30 = sshll.u32 %s5562_s5, 6 }
  0x60   : > { %s6664_s8 = sld [smem:[#allocation72_spill]]  ;;  %s826_s27 = scalar_lea.vmem [#allocation14], %s5899_s23 }
  0x61   : > { %s6665_s9 = sld [smem:[#allocation73_spill]] }
  0x62   : > { %s772_s3 = scalar_lea.hbm %s6661_s1, %s5562_s5  ;;  %s793_s1 = sshll.u32 %s786_s4, 4  ;;  %s794_s1 = int_to_ptr.vmem [resolvable:$true] %s793_s1 }
  0x63   : > { %s774_s21 = sshll.u32 %s772_s3, 4  ;;  %s789_s13 = scalar_lea.hbm %s6663_s7, %s5562_s5  ;;  %s775_s21 = int_to_ptr.hbm [resolvable:$true] %s774_s21 }
  0x64   : > { %s791_s3 = sshll.u32 %s789_s13, 4  ;;  %s6666_s10 = sld [smem:[#allocation74_spill]]  ;;  %s792_s3 = int_to_ptr.hbm [resolvable:$true] %s791_s3 }
  0x65   : > { %4689 = dma.hbm_to_vmem [thread:$0]  (!%p5883_p2), %s775_s21, 16, %s777_s14, %s5851_s25  }
  0x66   : > { %4692 = dma.hbm_to_vmem [thread:$0]  (!%p5883_p2), %s792_s3, 16, %s794_s1, %s5857_s24  }
  0x67   : > { %s809_s13 = scalar_lea.hbm %s6664_s8, %s5902_s30  ;;  %s804_s14 = scalar_lea.vmem [#allocation13], %s5899_s23 }
  0x68   : > { %s810_s21 = sshll.u32 %s809_s13, 4  ;;  %s812_s4 = sshll.u32 %s804_s14, 4  ;;  %s811_s21 = int_to_ptr.hbm [resolvable:$true] %s810_s21  ;;  %s813_s4 = int_to_ptr.vmem [resolvable:$true] %s812_s4 }
  0x69   : > { %4695 = dma.hbm_to_vmem [thread:$0]  (!%p5883_p2), %s811_s21, 1024, %s813_s4, %s5851_s25, %s6658_s22, %s6658_s22, %s6657_s2  }
  0x6a   : > { %s831_s7 = scalar_lea.hbm %s6665_s9, %s5902_s30  ;;  %s834_s8 = sshll.u32 %s826_s27, 4  ;;  %s835_s8 = int_to_ptr.vmem [resolvable:$true] %s834_s8 }
  0x6b   : > { %s832_s26 = sshll.u32 %s831_s7, 4  ;;  %s853_s21 = scalar_lea.hbm %s6666_s10, %s5902_s30  ;;  %s833_s26 = int_to_ptr.hbm [resolvable:$true] %s832_s26 }
  0x6c   : > { %4698 = dma.hbm_to_vmem [thread:$0]  (!%p5883_p2), %s833_s26, 1024, %s835_s8, %s5857_s24, %s6658_s22, %s6658_s22, %s6657_s2  }
  0x6d   : > { %s854_s4 = sshll.u32 %s853_s21, 4  ;;  %s848_s1 = scalar_lea.vmem [#allocation15], %s5899_s23  ;;  %s855_s4 = int_to_ptr.hbm [resolvable:$true] %s854_s4 }
  0x6e   : > { %s856_s3 = sshll.u32 %s848_s1, 4  ;;  %s6667_s7 = sld [smem:[#allocation69_spill]]  ;;  %s857_s3 = int_to_ptr.vmem [resolvable:$true] %s856_s3 }
  0x6f   : > { %4701 = dma.hbm_to_vmem [thread:$0]  (!%p5883_p2), %s855_s4, 1024, %s857_s3, %s5851_s25, %s6658_s22, %s6658_s22, %s6657_s2  }
  0x70   : > { %s5576_s13 = smov [#allocation9]   ;;  %s6668_s11 = sld [smem:[#allocation75_spill]] }
  0x71   : > { %s664_s14 = sshll.u32 %s5576_s13, 4  ;;  %s870_s10 = scalar_lea.vmem [#allocation16], %s5899_s23  ;;  %s665_s14 = int_to_ptr.vmem [resolvable:$true] %s664_s14 }
  0x72   : > { %s878_s20 = sshll.u32 %s870_s10, 4  ;;  %s6669_s12 = sld [smem:[#allocation76_spill]]  ;;  %s879_s20 = int_to_ptr.vmem [resolvable:$true] %s878_s20 }
  0x73   : > { %s6670_s19 = sld [smem:[#allocation83_spill]]  ;;  %s5577_s13 = smov [#allocation21]  }
  0x74   : > { %s662_s26 = sshll.u32 %s6667_s7, 4  ;;  %s891_s7 = scalar_lea.vmem [#allocation17], %s5874_s18  ;;  %s663_s26 = int_to_ptr.hbm [resolvable:$true] %s662_s26 }
  0x75   : > { %4673 = dma.hbm_to_vmem [thread:$0]  (!%p5779_p8), %s663_s26, 16, %s665_s14, [#allocation10]  }
  0x76   : > { %s875_s9 = scalar_lea.hbm %s6668_s11, %s5902_s30  ;;  %s898_s26 = sshll.u32 %s891_s7, 4  ;;  %s899_s26 = int_to_ptr.vmem [resolvable:$true] %s898_s26 }
  0x77   : > { %s876_s4 = sshll.u32 %s875_s9, 4  ;;  %s3736_s14 = sshll.u32 %s5874_s18, 8  ;;  %s877_s4 = int_to_ptr.hbm [resolvable:$true] %s876_s4 }
  0x78   : > { %4704 = dma.hbm_to_vmem [thread:$0]  (!%p5883_p2), %s877_s4, 1024, %s879_s20, %s5857_s24, %s6658_s22, %s6658_s22, %s6657_s2  }
  0x79   : > { %s894_s8 = scalar_lea.hbm %s6669_s12, %s5562_s5  ;;  %s687_s23 = sshll.u32 %s6670_s19, 4  ;;  %s688_s23 = int_to_ptr.hbm [resolvable:$true] %s687_s23 }
  0x7a   : > { %s896_s30 = sshll.u32 %s894_s8, 4  ;;  %s689_s20 = sshll.u32 %s5577_s13, 4  ;;  %s897_s30 = int_to_ptr.hbm [resolvable:$true] %s896_s30  ;;  %s690_s20 = int_to_ptr.vmem [resolvable:$true] %s689_s20 }
  0x7b   : > { %4707 = dma.hbm_to_vmem [thread:$0]  (!%p5883_p2), %s897_s30, 16, %s899_s26, %s5851_s25  }
  0x7c   : > { %4679 = dma.hbm_to_vmem [thread:$0]  (!%p5779_p8), %s688_s23, 4096, %s690_s20, [#allocation10], %s6658_s22, %s6658_s22, %s6657_s2  }
  0x7d   : > { %s4449_s21 = sshll.u32 %s5562_s5, 8  ;;  %s915_s1 = scalar_lea.vmem [#allocation18], %s3736_s14 }
  0x7e   : > { %s923_s4 = sshll.u32 %s915_s1, 4  ;;  %s6671_s8 = sld [smem:[#allocation78_spill]]  ;;  %s924_s4 = int_to_ptr.vmem [resolvable:$true] %s923_s4 }
  0x7f   : > { %s5578_s30 = smov 256   ;;  %s5579_s18 = smov 16  }
  0x80   : > { %s6672_s9 = sld [smem:[#allocation80_spill]]  ;;  %s944_s20 = scalar_lea.vmem [#allocation19], %s3736_s14 }
  0x81   : > { %s952_s11 = sshll.u32 %s944_s20, 4  ;;  %s953_s11 = int_to_ptr.vmem [resolvable:$true] %s952_s11 }
  0x84   : > { %s920_s7 = scalar_lea.hbm %s6671_s8, %s4449_s21 }
  0x85   : > { %s921_s26 = sshll.u32 %s920_s7, 4  ;;  %970 = sbr.rel (%p5768_p6) target bundleno = 2315 (0x90b), region = 104  ;;  %s922_s26 = int_to_ptr.hbm [resolvable:$true] %s921_s26 }
  0x86   : > { %4710 = dma.hbm_to_vmem [thread:$0]  (!%p5883_p2), %s922_s26, 4096, %s924_s4, %s5857_s24, %s5578_s30, %s5578_s30, %s5579_s18  }
  0x87   : > { %s949_s23 = scalar_lea.hbm %s6672_s9, %s4449_s21 }
  0x88   : > { %s950_s13 = sshll.u32 %s949_s23, 4  ;;  %s951_s13 = int_to_ptr.hbm [resolvable:$true] %s950_s13 }
  0x89   : > { %4713 = dma.hbm_to_vmem [thread:$0]  (!%p5883_p2), %s951_s13, 4096, %s953_s11, %s5851_s25, %s6658_s22, %s6658_s22, %s6657_s2  }
  0x8a   : > { %s6674_s3 = sld [smem:[#allocation52_spill]] }
  0x8b   : > { %s6675_s27 = sld [smem:[#allocation45_spill]] }
  0x90   : > { %s972_s4 = sand.u32 1, %s6674_s3  }
  0x91   : > { %s5990_s8 = sand.u32 1, %s6675_s27   ;;  %s5995_s14 = scalar_lea.sflag [#allocation4], %s972_s4 }
  0x92   : > { %6677 = sst [smem:[#allocation62_spill]] %s5990_s8  ;;  %s5993_s21 = sshll.u32 %s5990_s8, 3 }
  0x93   : > { %5461 = dma.done.wait (%p5822_p4), %s5995_s14, 128  }
  0x94   : > { %5463 = vsyncadd (%p5822_p4), %s5995_s14, 4294967168  ;;  %s6004_s11 = scalar_lea.sflag [#allocation7], %s972_s4 }
  0x95   : > { %5465 = dma.done.wait (%p5822_p4), %s6004_s11, 128  }
  0x96   : > { %5467 = vsyncadd (%p5822_p4), %s6004_s11, 4294967168 }
  0x97   : > { %5469 = dma.done.wait (%p79_p1), [#allocation7], 384  }
  0x98   : > { %5471 = vsyncadd (%p79_p1), [#allocation7], 4294966912 }
  0x99   : > { %5473 = dma.done.wait (%p79_p1), [#allocation10], 16  }
  0x9a   : > { %5475 = vsyncadd (%p79_p1), [#allocation10], 4294967280  ;;  %s6022_s22 = sand.u32 1, %s5534_s28  }
  0x9b   : > { %5477 = dma.done.wait (%p5764_p5), %s5995_s14, 16  }
  0x9c   : > { %5479 = vsyncadd (%p5764_p5), %s5995_s14, 4294967280 }
  0x9d   : > { %5481 = dma.done.wait (%p5764_p5), %s6004_s11, 16  }
  0x9e   : > { %5483 = vsyncadd (%p5764_p5), %s6004_s11, 4294967280  ;;  %s3747_s30 = sshll.u32 %s6022_s22, 6 }
  0x9f   : > { %s6039_s18 = scalar_lea.vmem [#allocation13], %s3747_s30 }
  0xa0   : > { %5485 = dma.done.wait (%p5764_p5), %s5995_s14, 1024  }
  0xa1   : > { %5487 = vsyncadd (%p5764_p5), %s5995_s14, 4294966272  ;;  %s6047_s15 = scalar_lea.vmem [#allocation14], %s3747_s30 }
  0xa2   : > { %5489 = dma.done.wait (%p5764_p5), %s6004_s11, 1024  }
  0xa3   : > { %5491 = vsyncadd (%p5764_p5), %s6004_s11, 4294966272  ;;  %s6055_s10 = scalar_lea.vmem [#allocation15], %s3747_s30 }
  0xa4   : > { %5493 = dma.done.wait (%p5764_p5), %s5995_s14, 1024  }
  0xa5   : > { %5495 = vsyncadd (%p5764_p5), %s5995_s14, 4294966272  ;;  %s6063_s9 = scalar_lea.vmem [#allocation16], %s3747_s30 }
  0xa6   : > { %5497 = dma.done.wait (%p5764_p5), %s6004_s11, 1024  }
  0xa7   : > { %5499 = vsyncadd (%p5764_p5), %s6004_s11, 4294966272 }
  0xa8   : > { %5501 = dma.done.wait (%p5764_p5), %s5995_s14, 16  }
  0xa9   : > { %5503 = vsyncadd (%p5764_p5), %s5995_s14, 4294967280  ;;  %s3751_s13 = sshll.u32 %s6022_s22, 8 }
  0xaa   : > { %s6079_s20 = scalar_lea.vmem [#allocation18], %s3751_s13 }
  0xab   : > { %5505 = dma.done.wait (%p5764_p5), %s6004_s11, 4096  }
  0xac   : > { %5507 = vsyncadd (%p5764_p5), %s6004_s11, 4294963200  ;;  %s6087_s1 = scalar_lea.vmem [#allocation19], %s3751_s13 }
  0xad   : > { %6679 = sst [smem:[#allocation63_spill]] %s6087_s1 }
  0xae   : > { %5509 = dma.done.wait (%p5764_p5), %s5995_s14, 4096  }
  0xaf   : > { %5511 = vsyncadd (%p5764_p5), %s5995_s14, 4294963200 }
  0xb0   : > { %5513 = dma.done.wait (%p79_p1), [#allocation7], 4096  }
  0xb1   : > { %5515 = vsyncadd (%p79_p1), [#allocation7], 4294963200 }
  0xb2   : > { %5517 = dma.done.wait (%p79_p1), [#allocation10], 4096  }
  0xb3   : > { %5519 = vsyncadd (%p79_p1), [#allocation10], 4294963200  ;;  %s6680_s27 = sld [smem:[#allocation48_spill]]  ;;  %s3756_s4 = sshll.u32 %s5990_s8, 4 }
  0xb4   : > { %s6681_s24 = sld [smem:[#allocation47_spill]]  ;;  %s1219_s30 = scalar_lea.vmem [#allocation22], %s5993_s21 }
  0xb5   : > { %s6682_s3 = sld [smem:[#allocation65_spill]] }
  0xb6   : > { %s6683_s26 = sld [smem:[#allocation67_spill]] }
  0xb7   : > { %s6684_s19 = sld [smem:[#allocation77_spill]] }
  0xb8   : > { %s6685_s28 = sld [smem:[#allocation79_spill]] }
  0xb9   : > { %p1227_p5 = scmp.lt.s32.totalorder %s6680_s27, 1  ;;  %s6686_s1 = sld [smem:[#allocation81_spill]] }
  0xba   : > { %p1237_p6 = scmp.lt.s32.totalorder %s6681_s24, 1  ;;  %p3762_p1 = scmp.ne.s32.totalorder %s6681_s24, 0 }
  0xbb   : > { %s6733_s27 = smov (!%p1227_p5, %s6680_s27), 1  ;;  %s6687_s12 = scalar_lea.vmem (!%p3762_p1), [#allocation3], %s5993_s21 }
  0xbc   : > { %s6108_s14 = scalar_select %p1237_p6, %s6681_s24, 1 }
  0xbd   : > { %s4451_s11 = sshll.u32 %s6733_s27, 4  ;;  %1251 = sbr.rel (%p3762_p1) target bundleno = 345 (0x159), region = 168 }
  0xbe   : > { %s1231_s13 = scalar_lea.vmem %s6682_s3, %s4451_s11  ;;  %s6116_s7 = scalar_lea.vmem %s6683_s26, %s4451_s11 }
  0xbf   : > { %s1239_s5 = scalar_lea.vmem %s6684_s19, %s6108_s14  ;;  %s3761_s0 = sshll.u32 %s6108_s14, 2 }
  0xc0   : > { %s6126_s6 = scalar_lea.vmem %s6685_s28, %s3761_s0  ;;  %s1246_s2 = scalar_lea.vmem %s6686_s1, %s6108_s14 }
  0xc1   : > { %s6133_s3 = scalar_lea.vmem [#allocation23], %s3756_s4 }
  0xc2   : > { %v4456_v0 = vld [vmem:[#allocation8 + $0x10] sm:$0xff]  ;;  %v5580_v1 = vmov 0   ;;  %v4455_v3 = vld [vmem:[#allocation8 + $0x8] sm:$0xff]  ;;  %v4454_v4 = vld [vmem:[#allocation8] sm:$0xff]  ;;  %vm1287_vm0 = vcmask 392192  }
  0xc3   : > { %4833 = vset.pattern.permute.xlu0 %v5580_v1  ;;  %v1305_v2 = vld [vmem:[%s1231_s13] sm:$0xff]  ;;  %1296 = vmatpush.bf16.msra.mxu0 %v4456_v0  ;;  %v1306_v5 = vld [vmem:[%s1231_s13 + $0x8] sm:$0xff]  ;;  %v4453_v6 = vld [vmem:[%s6687_s12] sm:$0xff] }
  0xc4   : > { %1309 = vperm.xlu0 %4833, %v1305_v2   ;;  %v4834_v7 = vld [vmem:[#allocation9] ss:$0 sm:$0xff] }
  0xc7   : > { %1297 = vmatpush.bf16.msra.mxu0 %v4455_v3 }
  0xcb   : > { %1298 = vmatpush.bf16.msra.mxu0 %v4454_v4 }
  0xcc   : > { %1314 = vperm.xlu0 %4833, %v1306_v5  }
  0xce   : > { %3779 = vmatmul.msk.bf16.vlgmr.msra.gmra.mxu0 %vm1287_vm0, %v4453_v6 }
 0x136   : > { %v1310_v8 = vpop.permute.xlu0 %1309 }
 0x13e   : > { %v1315_v14 = vpop.permute.xlu0 %1314 }
 0x14b   : > { %v1300_v9 = vpop.f32.mrf.mxu0 }
 0x14c   : > { %v1301_v10 = vadd.f32 %v4834_v7, %v1300_v9 }
 0x14e   : > { %v1317_v11 = vmul.f32 %v1310_v8, %v1301_v10 }
 0x150   : > { %1319 = vst [vmem:[#allocation2] sm:$0xff] %v1317_v11 }
 0x153   : > { %v1302_v12 = vpop.f32.mrf.mxu0 }
 0x154   : > { %v1303_v13 = vadd.f32 %v4834_v7, %v1302_v12 }
 0x156   : > { %v1318_v15 = vmul.f32 %v1315_v14, %v1303_v13 }
 0x158   : > { %1320 = vst [vmem:[#allocation2 + $0x8] sm:$0xff] %v1318_v15 }
 0x159 PF: > { %v6138_v16 = vld [vmem:[#allocation2] sm:$0xff]  ;;  %v5581_v18 = vmov 128.0   ;;  %v4462_v39 = vld [vmem:[%s6039_s18 + $0x28] sm:$0xff]  ;;  %v4461_v42 = vld [vmem:[%s6039_s18 + $0x20] sm:$0xff]  ;;  %s6688_s19 = scalar_lea.vmem [#allocation11], %s6022_s22  ;;  %s6689_s28 = scalar_lea.vmem [#allocation12], %s6022_s22 }
 0x15a   : > { %1325 = vadd.xlane.f32.xlu0 %v6138_v16  ;;  %4840 = vrcp.f32 %v5581_v18  ;;  %v4464_v33 = vld [vmem:[%s6039_s18 + $0x38] sm:$0xff]  ;;  %v4463_v36 = vld [vmem:[%s6039_s18 + $0x30] sm:$0xff]  ;;  %v4470_v40 = vld [vmem:[%s6047_s15 + $0x28] sm:$0xff]  ;;  %vm1635_vm8 = vcmask 130048   ;;  %s6690_s29 = scalar_lea.vmem [#allocation17], %s6022_s22  ;;  %s6691_s0 = sld [smem:[#allocation63_spill]] }
 0x15b   : > { %v4472_v34 = vld [vmem:[%s6047_s15 + $0x38] sm:$0xff]  ;;  %1447 = vmatpush.bf16.msra.mxu0 %v4464_v33  ;;  %v4471_v37 = vld [vmem:[%s6047_s15 + $0x30] sm:$0xff]  ;;  %v4478_v41 = vld [vmem:[%s6055_s10 + $0x28] sm:$0xff]  ;;  %s6694_s22 = sld [smem:[#allocation47_spill]] }
 0x15c   : > { %v4480_v35 = vld [vmem:[%s6055_s10 + $0x38] sm:$0xff]  ;;  %1525 = vmatpush.bf16.msra.mxu1 %v4472_v34  ;;  %v4479_v38 = vld [vmem:[%s6055_s10 + $0x30] sm:$0xff]  ;;  %v4469_v43 = vld [vmem:[%s6047_s15 + $0x20] sm:$0xff] }
 0x15d   : > { %1603 = vmatpush.bf16.msra.mxu2 %v4480_v35  ;;  %v4477_v44 = vld [vmem:[%s6055_s10 + $0x20] sm:$0xff]  ;;  %v4460_v45 = vld [vmem:[%s6039_s18 + $0x18] sm:$0xff]  ;;  %v4459_v48 = vld [vmem:[%s6039_s18 + $0x10] sm:$0xff] }
 0x15e   : > { %v4468_v46 = vld [vmem:[%s6047_s15 + $0x18] sm:$0xff]  ;;  %v4467_v49 = vld [vmem:[%s6047_s15 + $0x10] sm:$0xff]  ;;  %v4458_v51 = vld [vmem:[%s6039_s18 + $0x8] sm:$0xff] }
 0x15f   : > { %v6141_v17 = vld [vmem:[#allocation2 + $0x8] sm:$0xff]  ;;  %1448 = vmatpush.bf16.msra.mxu0 %v4463_v36  ;;  %v4475_v50 = vld [vmem:[%s6055_s10 + $0x10] sm:$0xff]  ;;  %v4466_v52 = vld [vmem:[%s6047_s15 + $0x8] sm:$0xff] }
 0x160   : > { %v4841_v19 = vpop.eup %4840  ;;  %1526 = vmatpush.bf16.msra.mxu1 %v4471_v37  ;;  %v4476_v47 = vld [vmem:[%s6055_s10 + $0x18] sm:$0xff]  ;;  %v4474_v53 = vld [vmem:[%s6055_s10 + $0x8] sm:$0xff]  ;;  %v4457_v55 = vld [vmem:[%s6039_s18] sm:$0xff] }
 0x161   : > { %v1330_v20 = vmul.f32 128.0, %v4841_v19  ;;  %vm1334_vm1 = vweird.f32 %v4841_v19  ;;  %1604 = vmatpush.bf16.msra.mxu2 %v4479_v38  ;;  %v4465_v56 = vld [vmem:[%s6047_s15] sm:$0xff]  ;;  %v4835_v12 = vld [vmem:[%s6688_s19] ss:$0 sm:$0xff]  ;;  %p4165_p8 = scmp.ne.s32.totalorder %s6694_s22, 1 }
 0x162   : > { %1327 = vadd.xlane.f32.xlu0 %v6141_v17  ;;  %v4473_v58 = vld [vmem:[%s6055_s10] sm:$0xff]  ;;  %s6695_s26 = scalar_lea.vmem (!%p4165_p8), [#allocation6], %s5993_s21  ;;  %s6696_s10 = sld [smem:[#allocation84_spill]] (!%p4165_p8) }
 0x163   : > { %v1331_v21 = vsub.f32 1.0, %v1330_v20  ;;  %1449 = vmatpush.bf16.msra.mxu0 %v4462_v39 }
 0x164   : > { %1527 = vmatpush.bf16.msra.mxu1 %v4470_v40 }
 0x165   : > { %v1332_v22 = vmul.f32 %v4841_v19, %v1331_v21  ;;  %1605 = vmatpush.bf16.msra.mxu2 %v4478_v41 }
 0x167   : > { %v1333_v23 = vadd.f32 %v4841_v19, %v1332_v22  ;;  %1450 = vmatpush.bf16.msra.mxu0 %v4461_v42 }
 0x168   : > { %1528 = vmatpush.bf16.msra.mxu1 %v4469_v43 }
 0x169   : > { %v6144_v24 = vsel %vm1334_vm1, %v4841_v19, %v1333_v23  ;;  %1606 = vmatpush.bf16.msra.mxu2 %v4477_v44  ;;  %v4836_v19 = vld [vmem:[%s6689_s28] ss:$0 sm:$0xff] }
 0x16b   : > { %1451 = vmatpush.bf16.msra.mxu0 %v4460_v45 }
 0x16c   : > { %1529 = vmatpush.bf16.msra.mxu1 %v4468_v46 }
 0x16d   : > { %1607 = vmatpush.bf16.msra.mxu2 %v4476_v47 }
 0x16f   : > { %1452 = vmatpush.bf16.msra.mxu0 %v4459_v48 }
 0x170   : > { %1530 = vmatpush.bf16.msra.mxu1 %v4467_v49 }
 0x171   : > { %1608 = vmatpush.bf16.msra.mxu2 %v4475_v50  ;;  %v4488_v50 = vld [vmem:[%s6063_s9 + $0x38] sm:$0xff] }
 0x173   : > { %1453 = vmatpush.bf16.msra.mxu0 %v4458_v51  ;;  %v4487_v51 = vld [vmem:[%s6063_s9 + $0x30] sm:$0xff] }
 0x174   : > { %1531 = vmatpush.bf16.msra.mxu1 %v4466_v52  ;;  %v4486_v52 = vld [vmem:[%s6063_s9 + $0x28] sm:$0xff] }
 0x175   : > { %1609 = vmatpush.bf16.msra.mxu2 %v4474_v53  ;;  %v4485_v53 = vld [vmem:[%s6063_s9 + $0x20] sm:$0xff] }
 0x177   : > { %1454 = vmatpush.bf16.msra.mxu0 %v4457_v55 }
 0x178   : > { %1532 = vmatpush.bf16.msra.mxu1 %v4465_v56 }
 0x179   : > { %1610 = vmatpush.bf16.msra.mxu2 %v4473_v58 }
 0x1cd   : > { %v1326_v25 = vpop.xlane.xlu0 %1325 }
 0x1ce   : > { %v1336_v26 = vmul.f32 %v6144_v24, %v1326_v25 }
 0x1d0   : > { %v6148_v27 = vsub.f32 %v6138_v16, %v1336_v26 }
 0x1d2   : > { %v1340_v28 = vmul.f32 %v6148_v27, %v6148_v27 }
 0x1d4   : > { %1342 = vadd.xlane.f32.xlu1 %v1340_v28 }
 0x1d5   : > { %v1328_v29 = vpop.xlane.xlu0 %1327 }
 0x1d6   : > { %v1337_v30 = vmul.f32 %v6144_v24, %v1328_v29 }
 0x1d8   : > { %v6154_v31 = vsub.f32 %v6141_v17, %v1337_v30 }
 0x1da   : > { %v1341_v32 = vmul.f32 %v6154_v31, %v6154_v31 }
 0x1dc   : > { %1344 = vadd.xlane.f32.xlu1 %v1341_v32 }
 0x247   : > { %v1343_v54 = vpop.xlane.xlu1 %1342 }
 0x248   : > { %v1346_v57 = vmul.f32 %v1343_v54, %v6144_v24  ;;  %v4484_v54 = vld [vmem:[%s6063_s9 + $0x18] sm:$0xff] }
 0x24a   : > { %v1348_v59 = vadd.f32 1e-05, %v1346_v57 }
 0x24c   : > { %4842 = vrsqrt.f32 %v1348_v59  ;;  %vm1356_vm3 = vweird.f32 %v1348_v59 }
 0x24f   : > { %v1345_v60 = vpop.xlane.xlu1 %1344 }
 0x250   : > { %v1347_v61 = vmul.f32 %v1345_v60, %v6144_v24 }
 0x252   : > { %v4843_v62 = vpop.eup %4842  ;;  %v1349_v63 = vadd.f32 1e-05, %v1347_v61 }
 0x253   : > { %v1351_v0 = vmul.f32 %v4843_v62, %v1348_v59  ;;  %vm1357_vm2 = vweird.f32 %v4843_v62 }
 0x254   : > { %4844 = vrsqrt.f32 %v1349_v63  ;;  %vm1358_vm4 = vmor %vm1356_vm3, %vm1357_vm2  ;;  %vm1366_vm6 = vweird.f32 %v1349_v63 }
 0x255   : > { %v1352_v1 = vmul.f32 %v4843_v62, %v1351_v0  ;;  %v4481_v0 = vld [vmem:[%s6063_s9] sm:$0xff] }
 0x257   : > { %v1353_v2 = vmul.f32 0.5, %v1352_v1 }
 0x259   : > { %v1354_v3 = vsub.f32 1.5, %v1353_v2 }
 0x25a   : > { %v4845_v4 = vpop.eup %4844 }
 0x25b   : > { %v1355_v5 = vmul.f32 %v4843_v62, %v1354_v3  ;;  %v1361_v6 = vmul.f32 %v4845_v4, %v1349_v63  ;;  %vm1367_vm5 = vweird.f32 %v4845_v4  ;;  %v4482_v63 = vld [vmem:[%s6063_s9 + $0x8] sm:$0xff] }
 0x25c   : > { %vm1368_vm7 = vmor %vm1366_vm6, %vm1367_vm5 }
 0x25d   : > { %v1362_v7 = vmul.f32 %v4845_v4, %v1361_v6  ;;  %v1359_v8 = vsel %vm1358_vm4, %v4843_v62, %v1355_v5  ;;  %v4483_v62 = vld [vmem:[%s6063_s9 + $0x10] sm:$0xff] }
 0x25e   : > { %v1370_v11 = vmul.f32 %v1359_v8, %v6148_v27 }
 0x25f   : > { %v1363_v9 = vmul.f32 0.5, %v1362_v7 }
 0x260   : > { %v1375_v18 = vmul.f32 %v4835_v12, %v1370_v11 }
 0x261   : > { %v1364_v10 = vsub.f32 1.5, %v1363_v9 }
 0x262   : > { %v1380_v21 = vadd.f32 %v4836_v19, %v1375_v18  ;;  %v4517_v18 = vld [vmem:[%s6079_s20 + $0xe4] sm:$0xf] }
 0x263   : > { %v1365_v13 = vmul.f32 %v4845_v4, %v1364_v10 }
 0x265   : > { %v1369_v14 = vsel %vm1368_vm7, %v4845_v4, %v1365_v13 }
 0x266   : > { %v1371_v15 = vmul.f32 %v1369_v14, %v6154_v31  ;;  %v4023_v14 = vld [vmem:[%s6079_s20 + $0xe0] sm:$0xf] }
 0x268   : > { %v1376_v20 = vmul.f32 %v4835_v12, %v1371_v15  ;;  %v4519_v15 = vld [vmem:[%s6079_s20 + $0xec] sm:$0xf0] }
 0x26a   : > { %v1381_v22 = vadd.f32 %v4836_v19, %v1376_v20  ;;  %v4024_v19 = vor.u32 %v4519_v15, %v4023_v14  ;;  %v4025_v20 = vld [vmem:[%s6079_s20 + $0xf0] sm:$0xf0]  ;;  %v3943_v15 = vld [vmem:[%s6079_s20 + $0x40] sm:$0xf] }
 0x26c   : > { %v1382_v23 = vpack.c.bf16 %v1381_v22, %v1380_v21  ;;  %v4031_v21 = vld [vmem:[%s6079_s20 + $0xe8] sm:$0xf]  ;;  %v4520_v22 = vld [vmem:[%s6079_s20 + $0xf4] sm:$0xf0] }
 0x26e   : > { %1455 = vmatmul.bf16.vlgmr.msra.gmra.mxu0 %v1382_v23  ;;  %1533 = vmatmul.bf16.vlgmr.msra.gmra.mxu1 %v1382_v23 }
 0x26f   : > { %1611 = vmatmul.bf16.vlgmr.msra.gmra.mxu2 %v1382_v23  ;;  %v4028_v23 = vor.u32 %v4517_v18, %v4025_v20  ;;  %v4499_v18 = vld [vmem:[%s6079_s20 + $0x4c] sm:$0xf0] }
 0x270   : > { %v3944_v20 = vor.u32 %v4499_v18, %v3943_v15  ;;  %v4838_v15 = vld [vmem:[%s1239_s5] ss:$0 sm:$0xff] }
 0x271   : > { %2027 = vmatpush.bf16.msrb.mxu1 %v4028_v23  ;;  %v4500_v23 = vld [vmem:[%s6079_s20 + $0x54] sm:$0xf0] }
 0x2eb   : > { %v1534_v25 = vpop.f32.mrf.mxu1  ;;  %v1456_v26 = vpop.f32.mrf.mxu0 }
 0x2f2   : > { %v1612_v27 = vpop.f32.mrf.mxu2 }
 0x2f3   : > { %v1536_v28 = vpop.f32.mrf.mxu1  ;;  %v1458_v30 = vpop.f32.mrf.mxu0 }
 0x2f4   : > { %v1618_v29 = vpack.c.bf16 %v1536_v28, %v1534_v25  ;;  %v1617_v33 = vpack.c.bf16 %v1458_v30, %v1456_v26  ;;  %v4032_v25 = vor.u32 %v4520_v22, %v4031_v21  ;;  %v4518_v26 = vld [vmem:[%s6079_s20 + $0xec] sm:$0xf]  ;;  %v4515_v30 = vld [vmem:[%s6079_s20 + $0xcc] sm:$0xf0]  ;;  %v3945_v21 = vld [vmem:[%s6079_s20 + $0x50] sm:$0xf0] }
 0x2f5   : > { %v3951_v22 = vld [vmem:[%s6079_s20 + $0x48] sm:$0xf] }
 0x2f6   : > { %1626 = vmatpush.bf16.xpose.msrb.mxu0 %v1618_v29  ;;  %2041 = vmatpush.bf16.msrb.mxu2 %v4032_v25  ;;  %v4007_v29 = vld [vmem:[%s6079_s20 + $0xc0] sm:$0xf] }
 0x2fa   : > { %v1614_v32 = vpop.f32.mrf.mxu2 }
 0x2fb   : > { %v1659_v31 = vpack.c.bf16 %v1614_v32, %v1612_v27  ;;  %v4033_v27 = vld [vmem:[%s6079_s20 + $0xf8] sm:$0xf0]  ;;  %v4513_v32 = vld [vmem:[%s6079_s20 + $0xc4] sm:$0xf] }
 0x2fc   : > { %v4036_v28 = vor.u32 %v4518_v26, %v4033_v27  ;;  %v3952_v26 = vor.u32 %v4500_v23, %v3951_v22  ;;  %v4498_v27 = vld [vmem:[%s6079_s20 + $0x4c] sm:$0xf]  ;;  %v4527_v22 = vld [vmem:[%s6691_s0 + $0x30] sm:$0xff] }
 0x2fd   : > { %1670 = vmatpush.bf16.msra.mxu3 %v1659_v31  ;;  %1627 = vmatmul.bf16.vlgmr.msrb.gmra.mxu0 %v1617_v33  ;;  %v4008_v33 = vor.u32 %v4515_v30, %v4007_v29  ;;  %v4009_v31 = vld [vmem:[%s6079_s20 + $0xd0] sm:$0xf0]  ;;  %v3927_v30 = vld [vmem:[%s6079_s20 + $0x20] sm:$0xf] }
 0x2fe   : > { %2013 = vmatpush.bf16.msra.mxu0 %v4024_v19  ;;  %v4497_v19 = vld [vmem:[%s6079_s20 + $0x44] sm:$0xf] }
 0x2ff   : > { %v3948_v25 = vor.u32 %v4497_v19, %v3945_v21  ;;  %v4536_v21 = vld [vmem:[%s6691_s0 + $0x78] sm:$0xff]  ;;  %v4535_v23 = vld [vmem:[%s6691_s0 + $0x70] sm:$0xff] }
 0x301   : > { %1742 = vmatpush.bf16.msrb.mxu3 %v4488_v50  ;;  %v4510_v50 = vld [vmem:[%s6079_s20 + $0xac] sm:$0xf] }
 0x302   : > { %2014 = vmatpush.bf16.msra.mxu0 %v4008_v33  ;;  %v4493_v33 = vld [vmem:[%s6079_s20 + $0x24] sm:$0xf] }
 0x305   : > { %1743 = vmatpush.bf16.msrb.mxu3 %v4487_v51  ;;  %v4001_v51 = vld [vmem:[%s6079_s20 + $0xb8] sm:$0xf0] }
 0x309   : > { %1744 = vmatpush.bf16.msrb.mxu3 %v4486_v52  ;;  %v4004_v52 = vor.u32 %v4510_v50, %v4001_v51  ;;  %v3919_v50 = vld [vmem:[%s6079_s20 + $0x8] sm:$0xf]  ;;  %v4492_v51 = vld [vmem:[%s6079_s20 + $0x14] sm:$0xf0] }
 0x30d   : > { %1745 = vmatpush.bf16.msrb.mxu3 %v4485_v53  ;;  %v3975_v53 = vld [vmem:[%s6079_s20 + $0x80] sm:$0xf] }
 0x311   : > { %1746 = vmatpush.bf16.msrb.mxu3 %v4484_v54  ;;  %v4507_v54 = vld [vmem:[%s6079_s20 + $0x8c] sm:$0xf0] }
 0x315   : > { %1747 = vmatpush.bf16.msrb.mxu3 %v4483_v62  ;;  %v4506_v62 = vld [vmem:[%s6079_s20 + $0x8c] sm:$0xf] }
 0x319   : > { %1748 = vmatpush.bf16.msrb.mxu3 %v4482_v63  ;;  %v3985_v63 = vld [vmem:[%s6079_s20 + $0x98] sm:$0xf0] }
 0x31d   : > { %1749 = vmatpush.bf16.msrb.mxu3 %v4481_v0  ;;  %v3988_v0 = vor.u32 %v4506_v62, %v3985_v63 }
 0x37a   : > { %v1628_v34 = vpop.f32.mrf.mxu0 }
 0x37b   : > { %v1633_v35 = vmul.f32 0.088388346, %v1628_v34  ;;  %v4015_v34 = vld [vmem:[%s6079_s20 + $0xc8] sm:$0xf] }
 0x37d   : > { %v1636_v36 = vsel %vm1635_vm8, %v1633_v35, -inf }
 0x37e   : > { %1637 = vmax.xlane.f32.xlu2 %v1636_v36  ;;  %v4012_v36 = vor.u32 %v4513_v32, %v4009_v31  ;;  %v4495_v32 = vld [vmem:[%s6079_s20 + $0x2c] sm:$0xf0] }
 0x37f   : > { %v3928_v31 = vor.u32 %v4495_v32, %v3927_v30  ;;  %v4551_v30 = vld [vmem:[%s6691_s0 + $0xf0] sm:$0xff]  ;;  %v4525_v32 = vld [vmem:[%s6691_s0 + $0x20] sm:$0xff] }
 0x380   : > { %2028 = vmatpush.bf16.msrb.mxu1 %v4012_v36  ;;  %v4496_v36 = vld [vmem:[%s6079_s20 + $0x34] sm:$0xf0] }
 0x382   : > { %v1630_v37 = vpop.f32.mrf.mxu0 }
 0x383   : > { %v1634_v38 = vmul.f32 0.088388346, %v1630_v37 }
 0x385   : > { %v1639_v39 = vsel %vm1635_vm8, %v1634_v38, -inf }
 0x386   : > { %1640 = vmax.xlane.f32.xlu2 %v1639_v39  ;;  %v4017_v39 = vld [vmem:[%s6079_s20 + $0xd8] sm:$0xf0] }
 0x3f1   : > { %v1638_v40 = vpop.xlane.xlu2 %1637 }
 0x3f2   : > { %v1642_v41 = vsub.f32 %v1633_v35, %v1638_v40  ;;  %v4516_v35 = vld [vmem:[%s6079_s20 + $0xd4] sm:$0xf0] }
 0x3f3   : > { %v4016_v37 = vor.u32 %v4516_v35, %v4015_v34  ;;  %v3929_v34 = vld [vmem:[%s6079_s20 + $0x30] sm:$0xf0]  ;;  %v3935_v35 = vld [vmem:[%s6079_s20 + $0x28] sm:$0xf] }
 0x3f4   : > { %v1644_v42 = vmul.f32 1.442695, %v1642_v41  ;;  %v3991_v41 = vld [vmem:[%s6079_s20 + $0xa0] sm:$0xf] }
 0x3f5   : > { %2042 = vmatpush.bf16.msrb.mxu2 %v4016_v37 }
 0x3f6   : > { %4846 = vpow2.f32 %v1644_v42  ;;  %v4511_v42 = vld [vmem:[%s6079_s20 + $0xac] sm:$0xf0] }
 0x3f9   : > { %v1641_v43 = vpop.xlane.xlu2 %1640 }
 0x3fa   : > { %v1643_v44 = vsub.f32 %v1634_v38, %v1641_v43  ;;  %v4514_v38 = vld [vmem:[%s6079_s20 + $0xcc] sm:$0xf]  ;;  %v4509_v43 = vld [vmem:[%s6079_s20 + $0xa4] sm:$0xf] }
 0x3fb   : > { %v4020_v40 = vor.u32 %v4514_v38, %v4017_v39  ;;  %v3932_v38 = vor.u32 %v4493_v33, %v3929_v34  ;;  %v3936_v39 = vor.u32 %v4496_v36, %v3935_v35  ;;  %v4533_v33 = vld [vmem:[%s6691_s0 + $0x60] sm:$0xff]  ;;  %v4550_v34 = vld [vmem:[%s6691_s0 + $0xe8] sm:$0xff]  ;;  %v4524_v35 = vld [vmem:[%s6691_s0 + $0x18] sm:$0xff] }
 0x3fc   : > { %v4847_v45 = vpop.eup %4846  ;;  %v1646_v46 = vmul.f32 1.442695, %v1643_v44  ;;  %v3992_v44 = vor.u32 %v4511_v42, %v3991_v41  ;;  %v3937_v41 = vld [vmem:[%s6079_s20 + $0x38] sm:$0xf0]  ;;  %v3911_v42 = vld [vmem:[%s6079_s20] sm:$0xf] }
 0x3fd   : > { %v1648_v47 = vsel %vm1635_vm8, %v4847_v45, 0.0  ;;  %v4532_v36 = vld [vmem:[%s6691_s0 + $0x58] sm:$0xff] }
 0x3fe   : > { %4848 = vpow2.f32 %v1646_v46  ;;  %1649 = vadd.xlane.f32.xlu0 %v1648_v47  ;;  %v3999_v46 = vld [vmem:[%s6079_s20 + $0xa8] sm:$0xf]  ;;  %v4512_v47 = vld [vmem:[%s6079_s20 + $0xb4] sm:$0xf0]  ;;  %2015 = vmatpush.bf16.msra.mxu0 %v3992_v44 }
 0x404   : > { %v4849_v48 = vpop.eup %4848 }
 0x405   : > { %v1651_v49 = vsel %vm1635_vm8, %v4849_v48, 0.0 }
 0x406   : > { %1652 = vadd.xlane.f32.xlu1 %v1651_v49  ;;  %v4000_v49 = vor.u32 %v4512_v47, %v3999_v46  ;;  %v4489_v46 = vld [vmem:[%s6079_s20 + $0x4] sm:$0xf]  ;;  %v3913_v47 = vld [vmem:[%s6079_s20 + $0x10] sm:$0xf0] }
 0x408   : > { %2043 = vmatpush.bf16.msrb.mxu2 %v4000_v49  ;;  %v3916_v49 = vor.u32 %v4489_v46, %v3913_v47  ;;  %v4522_v46 = vld [vmem:[%s6691_s0 + $0x8] sm:$0xff] }
 0x409   : > { %v4530_v47 = vld [vmem:[%s6691_s0 + $0x48] sm:$0xff] }
 0x471   : > { %v1650_v55 = vpop.xlane.xlu0 %1649 }
 0x472   : > { %4850 = vrcp.f32 %v1650_v55  ;;  %v4505_v55 = vld [vmem:[%s6079_s20 + $0x84] sm:$0xf] }
 0x478   : > { %v4851_v57 = vpop.eup %4850 }
 0x479   : > { %v1653_v56 = vpop.xlane.xlu1 %1652  ;;  %v1656_v59 = vmul.f32 %v4851_v57, %v4847_v45  ;;  %v3993_v45 = vld [vmem:[%s6079_s20 + $0xb0] sm:$0xf0] }
 0x47a   : > { %4852 = vrcp.f32 %v1653_v56  ;;  %v3976_v56 = vor.u32 %v4507_v54, %v3975_v53  ;;  %v3977_v57 = vld [vmem:[%s6079_s20 + $0x90] sm:$0xf0]  ;;  %v3920_v54 = vor.u32 %v4492_v51, %v3919_v50 }
 0x47c   : > { %2016 = vmatpush.bf16.msra.mxu0 %v3976_v56 }
 0x480   : > { %v4853_v58 = vpop.eup %4852 }
 0x481   : > { %v1657_v60 = vmul.f32 %v4853_v58, %v4849_v48  ;;  %v3996_v48 = vor.u32 %v4509_v43, %v3993_v45  ;;  %v3983_v58 = vld [vmem:[%s6079_s20 + $0x88] sm:$0xf]  ;;  %v4491_v45 = vld [vmem:[%s6079_s20 + $0xc] sm:$0xf0] }
 0x483   : > { %v1658_v61 = vpack.c.bf16 %v1657_v60, %v1656_v59  ;;  %2029 = vmatpush.bf16.msrb.mxu1 %v3996_v48  ;;  %v4508_v59 = vld [vmem:[%s6079_s20 + $0x94] sm:$0xf0]  ;;  %v3980_v60 = vor.u32 %v4505_v55, %v3977_v57  ;;  %v3912_v48 = vor.u32 %v4491_v45, %v3911_v42  ;;  %v3921_v55 = vld [vmem:[%s6079_s20 + $0x18] sm:$0xf0]  ;;  %v4540_v42 = vld [vmem:[%s6691_s0 + $0x98] sm:$0xff] }
 0x485   : > { %3876 = vmatmul.msk.bf16.vlgmr.msra.gmra.mxu3 %vm1635_vm8, %v1658_v61  ;;  %v3984_v61 = vor.u32 %v4508_v59, %v3983_v58 }
 0x486   : > { %2055 = vmatpush.bf16.msra.mxu3 %v4036_v28  ;;  %v3953_v28 = vld [vmem:[%s6079_s20 + $0x58] sm:$0xf0] }
 0x487   : > { %2030 = vmatpush.bf16.msrb.mxu1 %v3980_v60  ;;  %2044 = vmatpush.bf16.msrb.mxu2 %v3984_v61  ;;  %v3956_v29 = vor.u32 %v4498_v27, %v3953_v28  ;;  %v4526_v27 = vld [vmem:[%s6691_s0 + $0x28] sm:$0xff] }
 0x488   : > { %v4534_v28 = vld [vmem:[%s6691_s0 + $0x68] sm:$0xff] }
 0x48a   : > { %2056 = vmatpush.bf16.msra.mxu3 %v4020_v40  ;;  %v4494_v40 = vld [vmem:[%s6079_s20 + $0x2c] sm:$0xf] }
 0x48b   : > { %v3940_v44 = vor.u32 %v4494_v40, %v3937_v41  ;;  %v4531_v40 = vld [vmem:[%s6691_s0 + $0x50] sm:$0xff]  ;;  %v6319_v41 = vld [vmem:[%s6126_s6] sm:$0xf] }
 0x48c   : > { %v1846_v45 = vperm.slane %v6319_v41, 1 }
 0x48e   : > { %2057 = vmatpush.bf16.msra.mxu3 %v4004_v52  ;;  %v4490_v52 = vld [vmem:[%s6079_s20 + $0xc] sm:$0xf] }
 0x48f   : > { %v3924_v56 = vor.u32 %v4490_v52, %v3921_v55  ;;  %v4529_v55 = vld [vmem:[%s6691_s0 + $0x40] sm:$0xff] }
 0x492   : > { %2058 = vmatpush.bf16.msra.mxu3 %v3988_v0 }
 0x508   : > { %v1672_v1 = vpop.f32.mrf.mxu3 }
 0x510   : > { %v1674_v2 = vpop.f32.mrf.mxu3 }
 0x511   : > { %v1677_v3 = vpack.c.bf16 %v1674_v2, %v1672_v1  ;;  %v3959_v1 = vld [vmem:[%s6079_s20 + $0x60] sm:$0xf]  ;;  %v4503_v2 = vld [vmem:[%s6079_s20 + $0x6c] sm:$0xf0] }
 0x513   : > { %1750 = vmatmul.bf16.vlgmr.msrb.gmra.mxu3 %v1677_v3  ;;  %v4501_v3 = vld [vmem:[%s6079_s20 + $0x64] sm:$0xf] }
 0x596   : > { %v1751_v4 = vpop.f32.mrf.mxu3 }
 0x597   : > { %v6204_v5 = vadd.f32 %v1751_v4, %v6138_v16  ;;  %v3960_v4 = vor.u32 %v4503_v2, %v3959_v1 }
 0x599   : > { %1760 = vadd.xlane.f32.xlu2 %v6204_v5  ;;  %2017 = vmatpush.bf16.msra.mxu0 %v3960_v4 }
 0x59d   : > { %2018 = vmatpush.bf16.msra.mxu0 %v3944_v20 }
 0x59e   : > { %v1753_v6 = vpop.f32.mrf.mxu3 }
 0x59f   : > { %v6208_v7 = vadd.f32 %v1753_v6, %v6141_v17  ;;  %v3961_v6 = vld [vmem:[%s6079_s20 + $0x70] sm:$0xf0] }
 0x5a1   : > { %1762 = vadd.xlane.f32.xlu0 %v6208_v7  ;;  %2019 = vmatpush.bf16.msra.mxu0 %v3928_v31  ;;  %v4542_v31 = vld [vmem:[%s6691_s0 + $0xa8] sm:$0xff] }
 0x5a5   : > { %2020 = vmatpush.bf16.msra.mxu0 %v3912_v48  ;;  %v4539_v48 = vld [vmem:[%s6691_s0 + $0x90] sm:$0xff] }
 0x60c   : > { %v1761_v8 = vpop.xlane.xlu2 %1760 }
 0x60d   : > { %v1764_v9 = vmul.f32 %v1761_v8, %v6144_v24  ;;  %v3967_v8 = vld [vmem:[%s6079_s20 + $0x68] sm:$0xf] }
 0x60f   : > { %v6213_v10 = vsub.f32 %v6204_v5, %v1764_v9  ;;  %v4504_v9 = vld [vmem:[%s6079_s20 + $0x74] sm:$0xf0] }
 0x611   : > { %v1768_v16 = vmul.f32 %v6213_v10, %v6213_v10 }
 0x613   : > { %1770 = vadd.xlane.f32.xlu1 %v1768_v16  ;;  %v3964_v16 = vor.u32 %v4501_v3, %v3961_v6 }
 0x614   : > { %v1763_v11 = vpop.xlane.xlu0 %1762 }
 0x615   : > { %v1765_v17 = vmul.f32 %v1763_v11, %v6144_v24  ;;  %v3968_v11 = vor.u32 %v4504_v9, %v3967_v8  ;;  %2031 = vmatpush.bf16.msrb.mxu1 %v3964_v16  ;;  %v4837_v16 = vld [vmem:[%s6690_s29] ss:$0 sm:$0xff] }
 0x617   : > { %v6219_v12 = vsub.f32 %v6208_v7, %v1765_v17  ;;  %v4502_v17 = vld [vmem:[%s6079_s20 + $0x6c] sm:$0xf]  ;;  %2045 = vmatpush.bf16.msrb.mxu2 %v3968_v11 }
 0x619   : > { %v1769_v13 = vmul.f32 %v6219_v12, %v6219_v12  ;;  %2032 = vmatpush.bf16.msrb.mxu1 %v3948_v25  ;;  %v4544_v25 = vld [vmem:[%s6691_s0 + $0xb8] sm:$0xff] }
 0x61b   : > { %1772 = vadd.xlane.f32.xlu2 %v1769_v13  ;;  %v3969_v13 = vld [vmem:[%s6079_s20 + $0x78] sm:$0xf0]  ;;  %2046 = vmatpush.bf16.msrb.mxu2 %v3952_v26  ;;  %v4552_v26 = vld [vmem:[%s6691_s0 + $0xf8] sm:$0xff] }
 0x61c   : > { %v3972_v14 = vor.u32 %v4502_v17, %v3969_v13 }
 0x61d   : > { %2033 = vmatpush.bf16.msrb.mxu1 %v3932_v38  ;;  %v4549_v38 = vld [vmem:[%s6691_s0 + $0xe0] sm:$0xff] }
 0x61e   : > { %2059 = vmatpush.bf16.msra.mxu3 %v3972_v14 }
 0x61f   : > { %2047 = vmatpush.bf16.msrb.mxu2 %v3936_v39  ;;  %v4523_v39 = vld [vmem:[%s6691_s0 + $0x10] sm:$0xff] }
 0x621   : > { %2034 = vmatpush.bf16.msrb.mxu1 %v3916_v49  ;;  %v4547_v49 = vld [vmem:[%s6691_s0 + $0xd0] sm:$0xff] }
 0x622   : > { %2060 = vmatpush.bf16.msra.mxu3 %v3956_v29  ;;  %v4543_v29 = vld [vmem:[%s6691_s0 + $0xb0] sm:$0xff] }
 0x623   : > { %2048 = vmatpush.bf16.msrb.mxu2 %v3920_v54  ;;  %v4521_v54 = vld [vmem:[%s6691_s0] sm:$0xff] }
 0x625   : > { %2415 = vmatpush.bf16.msra.mxu1 %v4536_v21 }
 0x626   : > { %2061 = vmatpush.bf16.msra.mxu3 %v3940_v44  ;;  %v1845_v44 = vperm.slane %v6319_v41, 0 }
 0x627   : > { %2429 = vmatpush.bf16.msra.mxu2 %v4544_v25 }
 0x629   : > { %2416 = vmatpush.bf16.msra.mxu1 %v4535_v23 }
 0x62a   : > { %2062 = vmatpush.bf16.msra.mxu3 %v3924_v56 }
 0x62b   : > { %2430 = vmatpush.bf16.msra.mxu2 %v4543_v29 }
 0x62d   : > { %2417 = vmatpush.bf16.msra.mxu1 %v4534_v28 }
 0x62e   : > { %2443 = vmatpush.bf16.msrb.mxu3 %v4552_v26 }
 0x62f   : > { %2431 = vmatpush.bf16.msra.mxu2 %v4542_v31 }
 0x631   : > { %2418 = vmatpush.bf16.msra.mxu1 %v4533_v33 }
 0x632   : > { %2444 = vmatpush.bf16.msrb.mxu3 %v4551_v30 }
 0x635   : > { %2419 = vmatpush.bf16.msra.mxu1 %v4532_v36 }
 0x636   : > { %2445 = vmatpush.bf16.msrb.mxu3 %v4550_v34 }
 0x639   : > { %2420 = vmatpush.bf16.msra.mxu1 %v4531_v40 }
 0x63a   : > { %2446 = vmatpush.bf16.msrb.mxu3 %v4549_v38 }
 0x63d   : > { %2421 = vmatpush.bf16.msra.mxu1 %v4530_v47 }
 0x641   : > { %2422 = vmatpush.bf16.msra.mxu1 %v4529_v55 }
 0x686   : > { %v1771_v37 = vpop.xlane.xlu1 %1770 }
 0x687   : > { %v1774_v43 = vmul.f32 %v1771_v37, %v6144_v24  ;;  %v4541_v37 = vld [vmem:[%s6691_s0 + $0xa0] sm:$0xff] }
 0x688   : > { %2432 = vmatpush.bf16.msra.mxu2 %v4541_v37 }
 0x689   : > { %v1776_v53 = vadd.f32 1e-05, %v1774_v43  ;;  %v4548_v43 = vld [vmem:[%s6691_s0 + $0xd8] sm:$0xff] }
 0x68a   : > { %2447 = vmatpush.bf16.msrb.mxu3 %v4548_v43 }
 0x68b   : > { %4854 = vrsqrt.f32 %v1776_v53  ;;  %vm1784_vm10 = vweird.f32 %v1776_v53 }
 0x68c   : > { %2433 = vmatpush.bf16.msra.mxu2 %v4540_v42 }
 0x68e   : > { %v1773_v57 = vpop.xlane.xlu2 %1772  ;;  %2448 = vmatpush.bf16.msrb.mxu3 %v4547_v49 }
 0x68f   : > { %v1775_v58 = vmul.f32 %v1773_v57, %v6144_v24 }
 0x690   : > { %2434 = vmatpush.bf16.msra.mxu2 %v4539_v48 }
 0x691   : > { %v4855_v59 = vpop.eup %4854  ;;  %v1777_v60 = vadd.f32 1e-05, %v1775_v58  ;;  %v4538_v58 = vld [vmem:[%s6691_s0 + $0x88] sm:$0xff] }
 0x692   : > { %v1779_v61 = vmul.f32 %v4855_v59, %v1776_v53  ;;  %vm1785_vm9 = vweird.f32 %v4855_v59 }
 0x693   : > { %4856 = vrsqrt.f32 %v1777_v60  ;;  %vm1786_vm11 = vmor %vm1784_vm10, %vm1785_vm9  ;;  %vm1794_vm13 = vweird.f32 %v1777_v60 }
 0x694   : > { %v1780_v62 = vmul.f32 %v4855_v59, %v1779_v61  ;;  %v1848_v61 = vperm.slane %v6319_v41, 3  ;;  %2435 = vmatpush.bf16.msra.mxu2 %v4538_v58 }
 0x696   : > { %v1781_v63 = vmul.f32 0.5, %v1780_v62 }
 0x698   : > { %v1782_v0 = vsub.f32 1.5, %v1781_v63 }
 0x699   : > { %v4857_v1 = vpop.eup %4856 }
 0x69a   : > { %v1783_v2 = vmul.f32 %v4855_v59, %v1782_v0  ;;  %v1789_v3 = vmul.f32 %v4857_v1, %v1777_v60  ;;  %vm1795_vm12 = vweird.f32 %v4857_v1  ;;  %v1847_v60 = vperm.slane %v6319_v41, 2 }
 0x69b   : > { %vm1796_vm14 = vmor %vm1794_vm13, %vm1795_vm12 }
 0x69c   : > { %v1790_v4 = vmul.f32 %v4857_v1, %v1789_v3  ;;  %v1787_v6 = vsel %vm1786_vm11, %v4855_v59, %v1783_v2  ;;  %v4546_v59 = vld [vmem:[%s6691_s0 + $0xc8] sm:$0xff] }
 0x69d   : > { %v1798_v24 = vmul.f32 %v1787_v6, %v6213_v10  ;;  %2449 = vmatpush.bf16.msrb.mxu3 %v4546_v59  ;;  %v4545_v6 = vld [vmem:[%s6691_s0 + $0xc0] sm:$0xff] }
 0x69e   : > { %v1791_v8 = vmul.f32 0.5, %v1790_v4  ;;  %v4537_v4 = vld [vmem:[%s6691_s0 + $0x80] sm:$0xff] }
 0x69f   : > { %v1803_v14 = vmul.f32 %v4837_v16, %v1798_v24  ;;  %2436 = vmatpush.bf16.msra.mxu2 %v4537_v4 }
 0x6a0   : > { %v1792_v9 = vsub.f32 1.5, %v1791_v8 }
 0x6a1   : > { %v1808_v10 = vadd.f32 %v4838_v15, %v1803_v14  ;;  %2450 = vmatpush.bf16.msrb.mxu3 %v4545_v6 }
 0x6a2   : > { %v1793_v11 = vmul.f32 %v4857_v1, %v1792_v9 }
 0x6a4   : > { %v1797_v17 = vsel %vm1796_vm14, %v4857_v1, %v1793_v11 }
 0x6a5   : > { %v1799_v13 = vmul.f32 %v1797_v17, %v6219_v12  ;;  %v4528_v12 = vld [vmem:[%s6691_s0 + $0x38] sm:$0xff] }
 0x6a6   : > { %2401 = vmatpush.bf16.msrb.mxu0 %v4528_v12 }
 0x6a7   : > { %v1804_v18 = vmul.f32 %v4837_v16, %v1799_v13 }
 0x6a9   : > { %v1809_v19 = vadd.f32 %v4838_v15, %v1804_v18 }
 0x6aa   : > { %2402 = vmatpush.bf16.msrb.mxu0 %v4527_v22 }
 0x6ab   : > { %v1810_v20 = vpack.c.bf16 %v1809_v19, %v1808_v10 }
 0x6ad   : > { %2021 = vmatmul.bf16.vlgmr.msra.gmra.mxu0 %v1810_v20  ;;  %2035 = vmatmul.bf16.vlgmr.msrb.gmra.mxu1 %v1810_v20 }
 0x6ae   : > { %2049 = vmatmul.bf16.vlgmr.msrb.gmra.mxu2 %v1810_v20  ;;  %2063 = vmatmul.bf16.vlgmr.msra.gmra.mxu3 %v1810_v20 }
 0x6af   : > { %2403 = vmatpush.bf16.msrb.mxu0 %v4526_v27 }
 0x6b3   : > { %2404 = vmatpush.bf16.msrb.mxu0 %v4525_v32 }
 0x6b7   : > { %2405 = vmatpush.bf16.msrb.mxu0 %v4524_v35 }
 0x6bb   : > { %2406 = vmatpush.bf16.msrb.mxu0 %v4523_v39 }
 0x6bf   : > { %2407 = vmatpush.bf16.msrb.mxu0 %v4522_v46 }
 0x6c3   : > { %2408 = vmatpush.bf16.msrb.mxu0 %v4521_v54 }
 0x72a   : > { %v2022_v50 = vpop.f32.mrf.mxu0  ;;  %v2036_v51 = vpop.f32.mrf.mxu1 }
 0x72b   : > { %v6329_v52 = vadd.f32 %v2022_v50, %v1845_v44  ;;  %v6331_v53 = vadd.f32 %v2036_v51, %v1846_v45 }
 0x72d   : > { %v2069_v56 = vmul.f32 %v6329_v52, %v6329_v52  ;;  %v2070_v57 = vmul.f32 %v6331_v53, %v6331_v53 }
 0x72f   : > { %v2077_v62 = vmul.f32 %v2069_v56, %v6329_v52  ;;  %v2078_v63 = vmul.f32 %v2070_v57, %v6331_v53 }
 0x731   : > { %v2085_v0 = vmul.f32 0.044715, %v2077_v62  ;;  %v2086_v1 = vmul.f32 0.044715, %v2078_v63  ;;  %v2050_v2 = vpop.f32.mrf.mxu2  ;;  %v2064_v3 = vpop.f32.mrf.mxu3 }
 0x732   : > { %v6347_v8 = vadd.f32 %v2050_v2, %v1847_v60  ;;  %v6349_v9 = vadd.f32 %v2064_v3, %v1848_v61  ;;  %v2024_v24 = vpop.f32.mrf.mxu0  ;;  %v2038_v16 = vpop.f32.mrf.mxu1 }
 0x733   : > { %v2093_v11 = vadd.f32 %v2085_v0, %v6329_v52  ;;  %v2094_v17 = vadd.f32 %v2086_v1, %v6331_v53  ;;  %v6353_v13 = vadd.f32 %v2024_v24, %v1845_v44  ;;  %v6355_v14 = vadd.f32 %v2038_v16, %v1846_v45 }
 0x734   : > { %v2071_v15 = vmul.f32 %v6347_v8, %v6347_v8  ;;  %v2072_v18 = vmul.f32 %v6349_v9, %v6349_v9 }
 0x735   : > { %v2101_v10 = vmul.f32 0.7978846, %v2093_v11  ;;  %v2073_v19 = vmul.f32 %v6353_v13, %v6353_v13  ;;  %v2074_v20 = vmul.f32 %v6355_v14, %v6355_v14  ;;  %v2102_v22 = vmul.f32 0.7978846, %v2094_v17 }
 0x736   : > { %v2079_v12 = vmul.f32 %v2071_v15, %v6347_v8  ;;  %v2080_v21 = vmul.f32 %v2072_v18, %v6349_v9 }
 0x737   : > { %v2081_v23 = vmul.f32 %v2073_v19, %v6353_v13  ;;  %v2082_v25 = vmul.f32 %v2074_v20, %v6355_v14  ;;  %4858 = vtanh.f32 %v2101_v10 }
 0x738   : > { %v2087_v26 = vmul.f32 0.044715, %v2079_v12  ;;  %v2088_v27 = vmul.f32 0.044715, %v2080_v21  ;;  %4860 = vtanh.f32 %v2102_v22 }
 0x739   : > { %v2089_v28 = vmul.f32 0.044715, %v2081_v23  ;;  %v2090_v29 = vmul.f32 0.044715, %v2082_v25  ;;  %v2052_v30 = vpop.f32.mrf.mxu2  ;;  %v2066_v32 = vpop.f32.mrf.mxu3 }
 0x73a   : > { %v2095_v33 = vadd.f32 %v2087_v26, %v6347_v8  ;;  %v2096_v31 = vadd.f32 %v2088_v27, %v6349_v9  ;;  %v2053_v34 = vadd.f32 %v2052_v30, %v1847_v60  ;;  %v2067_v35 = vadd.f32 %v2066_v32, %v1848_v61 }
 0x73b   : > { %v2097_v36 = vadd.f32 %v2089_v28, %v6353_v13  ;;  %v2098_v37 = vadd.f32 %v2090_v29, %v6355_v14 }
 0x73c   : > { %v2103_v38 = vmul.f32 0.7978846, %v2095_v33  ;;  %v2104_v39 = vmul.f32 0.7978846, %v2096_v31  ;;  %v2075_v40 = vmul.f32 %v2053_v34, %v2053_v34  ;;  %v2076_v41 = vmul.f32 %v2067_v35, %v2067_v35 }
 0x73d   : > { %v2105_v42 = vmul.f32 0.7978846, %v2097_v36  ;;  %v2106_v43 = vmul.f32 0.7978846, %v2098_v37  ;;  %v4859_v46 = vpop.eup %4858 }
 0x73e   : > { %4862 = vtanh.f32 %v2103_v38  ;;  %v2083_v44 = vmul.f32 %v2075_v40, %v2053_v34  ;;  %v2084_v45 = vmul.f32 %v2076_v41, %v2067_v35  ;;  %v4861_v49 = vpop.eup %4860  ;;  %v2117_v54 = vadd.f32 1.0, %v4859_v46 }
 0x73f   : > { %4864 = vtanh.f32 %v2104_v39  ;;  %v2118_v56 = vadd.f32 1.0, %v4861_v49 }
 0x740   : > { %4866 = vtanh.f32 %v2105_v42  ;;  %v2091_v47 = vmul.f32 0.044715, %v2083_v44  ;;  %v2092_v48 = vmul.f32 0.044715, %v2084_v45  ;;  %v2125_v62 = vmul.f32 0.5, %v2117_v54 }
 0x741   : > { %4868 = vtanh.f32 %v2106_v43  ;;  %v2126_v0 = vmul.f32 0.5, %v2118_v56 }
 0x742   : > { %v2099_v50 = vadd.f32 %v2091_v47, %v2053_v34  ;;  %v2100_v51 = vadd.f32 %v2092_v48, %v2067_v35  ;;  %v2133_v24 = vmul.f32 %v2125_v62, %v6329_v52 }
 0x743   : > { %v2134_v17 = vmul.f32 %v2126_v0, %v6331_v53 }
 0x744   : > { %v4863_v55 = vpop.eup %4862  ;;  %v2107_v57 = vmul.f32 0.7978846, %v2099_v50  ;;  %v2108_v58 = vmul.f32 0.7978846, %v2100_v51 }
 0x745   : > { %v4865_v59 = vpop.eup %4864  ;;  %v2119_v2 = vadd.f32 1.0, %v4863_v55 }
 0x746   : > { %v4867_v60 = vpop.eup %4866  ;;  %4870 = vtanh.f32 %v2107_v57  ;;  %v2120_v4 = vadd.f32 1.0, %v4865_v59 }
 0x747   : > { %v4869_v61 = vpop.eup %4868  ;;  %v2121_v63 = vadd.f32 1.0, %v4867_v60  ;;  %4872 = vtanh.f32 %v2108_v58  ;;  %v2127_v10 = vmul.f32 0.5, %v2119_v2 }
 0x748   : > { %v2122_v1 = vadd.f32 1.0, %v4869_v61  ;;  %v2128_v12 = vmul.f32 0.5, %v2120_v4 }
 0x749   : > { %v2129_v3 = vmul.f32 0.5, %v2121_v63  ;;  %v2135_v52 = vmul.f32 %v2127_v10, %v6347_v8  ;;  %v4839_v8 = vld [vmem:[%s1246_s2] ss:$0 sm:$0xff] }
 0x74a   : > { %v2130_v6 = vmul.f32 0.5, %v2122_v1  ;;  %v2136_v26 = vmul.f32 %v2128_v12, %v6349_v9 }
 0x74b   : > { %v2137_v16 = vmul.f32 %v2129_v3, %v6353_v13 }
 0x74c   : > { %v4871_v11 = vpop.eup %4870  ;;  %v2138_v15 = vmul.f32 %v2130_v6, %v6355_v14 }
 0x74d   : > { %v4873_v18 = vpop.eup %4872  ;;  %v2123_v19 = vadd.f32 1.0, %v4871_v11  ;;  %v2141_v20 = vpack.c.bf16 %v2137_v16, %v2133_v24 }
 0x74e   : > { %v2124_v21 = vadd.f32 1.0, %v4873_v18  ;;  %v2142_v22 = vpack.c.bf16 %v2138_v15, %v2134_v17 }
 0x74f   : > { %v2131_v23 = vmul.f32 0.5, %v2123_v19  ;;  %2409 = vmatmul.bf16.vlgmr.msrb.gmra.mxu0 %v2141_v20 }
 0x750   : > { %v2132_v25 = vmul.f32 0.5, %v2124_v21  ;;  %2423 = vmatmul.bf16.vlgmr.msra.gmra.mxu1 %v2142_v22 }
 0x751   : > { %v2139_v13 = vmul.f32 %v2131_v23, %v2053_v34 }
 0x752   : > { %v2140_v53 = vmul.f32 %v2132_v25, %v2067_v35 }
 0x753   : > { %v2143_v27 = vpack.c.bf16 %v2139_v13, %v2135_v52 }
 0x754   : > { %v2144_v14 = vpack.c.bf16 %v2140_v53, %v2136_v26 }
 0x755   : > { %2437 = vmatmul.bf16.vlgmr.msra.gmra.mxu2 %v2143_v27 }
 0x756   : > { %2451 = vmatmul.bf16.vlgmr.msrb.gmra.mxu3 %v2144_v14 }
 0x7cc   : > { %v2410_v28 = vpop.f32.mrf.mxu0 }
 0x7cd   : > { %v2424_v29 = vpop.f32.mrf.mxu1 }
 0x7ce   : > { %v2425_v30 = vadd.f32 %v2424_v29, %v2410_v28 }
 0x7d4   : > { %v2412_v34 = vpop.f32.mrf.mxu0 }
 0x7d5   : > { %v2426_v37 = vpop.f32.mrf.mxu1 }
 0x7d6   : > { %v2427_v35 = vadd.f32 %v2426_v37, %v2412_v34 }
 0x7d8   : > { %v2438_v32 = vpop.f32.mrf.mxu2 }
 0x7d9   : > { %v2439_v33 = vadd.f32 %v2438_v32, %v2425_v30  ;;  %v2452_v31 = vpop.f32.mrf.mxu3 }
 0x7db   : > { %v2453_v36 = vadd.f32 %v2452_v31, %v2439_v33 }
 0x7dd   : > { %v2457_v9 = vadd.f32 %v2453_v36, %v6204_v5 }
 0x7df   : > { %v2463_v38 = vadd.f32 %v4839_v8, %v2457_v9 }
 0x7e0   : > { %v2440_v39 = vpop.f32.mrf.mxu2 }
 0x7e1   : > { %2465 = vst [vmem:[#allocation2] sm:$0xff] %v2463_v38  ;;  %v2441_v40 = vadd.f32 %v2440_v39, %v2427_v35  ;;  %v2454_v41 = vpop.f32.mrf.mxu3 }
 0x7e3   : > { %v2455_v42 = vadd.f32 %v2454_v41, %v2441_v40 }
 0x7e5   : > { %v2458_v43 = vadd.f32 %v2455_v42, %v6208_v7  ;;  %2470 = sbr.rel (%p4165_p8) target bundleno = 2270 (0x8de), region = 172 }
 0x7e7   : > { %v2464_v44 = vadd.f32 %v4839_v8, %v2458_v43 }
 0x7e9   : > { %2466 = vst [vmem:[#allocation2 + $0x8] sm:$0xff] %v2464_v44 }
 0x7ea   : > { %v4569_v45 = vld [vmem:[#allocation21 + $0x38] sm:$0xff]  ;;  %v4568_v5 = vld [vmem:[#allocation21 + $0x30] sm:$0xff]  ;;  %v4567_v7 = vld [vmem:[#allocation21 + $0x28] sm:$0xff] }
 0x7eb   : > { %v4561_v46 = vld [vmem:[#allocation20 + $0x38] sm:$0xff]  ;;  %2564 = vmatpush.bf16.msra.mxu0 %v4569_v45  ;;  %v4560_v49 = vld [vmem:[#allocation20 + $0x30] sm:$0xff]  ;;  %v4559_v54 = vld [vmem:[#allocation20 + $0x28] sm:$0xff] }
 0x7ec   : > { %v4585_v47 = vld [vmem:[#allocation21 + $0x78] sm:$0xff]  ;;  %2626 = vmatpush.bf16.msra.mxu1 %v4561_v46  ;;  %v4584_v50 = vld [vmem:[#allocation21 + $0x70] sm:$0xff]  ;;  %v4583_v55 = vld [vmem:[#allocation21 + $0x68] sm:$0xff] }
 0x7ed   : > { %v4577_v48 = vld [vmem:[#allocation20 + $0x78] sm:$0xff]  ;;  %2766 = vmatpush.bf16.msra.mxu2 %v4585_v47  ;;  %v4576_v51 = vld [vmem:[#allocation20 + $0x70] sm:$0xff]  ;;  %v4575_v56 = vld [vmem:[#allocation20 + $0x68] sm:$0xff] }
 0x7ee   : > { %2828 = vmatpush.bf16.msra.mxu3 %v4577_v48  ;;  %v4566_v57 = vld [vmem:[#allocation21 + $0x20] sm:$0xff]  ;;  %v4565_v61 = vld [vmem:[#allocation21 + $0x18] sm:$0xff]  ;;  %v4564_v1 = vld [vmem:[#allocation21 + $0x10] sm:$0xff] }
 0x7ef   : > { %2565 = vmatpush.bf16.msra.mxu0 %v4568_v5  ;;  %v4558_v58 = vld [vmem:[#allocation20 + $0x20] sm:$0xff]  ;;  %v4557_v62 = vld [vmem:[#allocation20 + $0x18] sm:$0xff]  ;;  %v4556_v2 = vld [vmem:[#allocation20 + $0x10] sm:$0xff] }
 0x7f0   : > { %2627 = vmatpush.bf16.msra.mxu1 %v4560_v49  ;;  %v4582_v59 = vld [vmem:[#allocation21 + $0x60] sm:$0xff]  ;;  %v4581_v63 = vld [vmem:[#allocation21 + $0x58] sm:$0xff]  ;;  %v4580_v3 = vld [vmem:[#allocation21 + $0x50] sm:$0xff] }
 0x7f1   : > { %2767 = vmatpush.bf16.msra.mxu2 %v4584_v50  ;;  %v4574_v60 = vld [vmem:[#allocation20 + $0x60] sm:$0xff]  ;;  %v4573_v0 = vld [vmem:[#allocation20 + $0x58] sm:$0xff]  ;;  %v4572_v4 = vld [vmem:[#allocation20 + $0x50] sm:$0xff] }
 0x7f2   : > { %2829 = vmatpush.bf16.msra.mxu3 %v4576_v51  ;;  %v4563_v6 = vld [vmem:[#allocation21 + $0x8] sm:$0xff]  ;;  %v4562_v17 = vld [vmem:[#allocation21] sm:$0xff]  ;;  %v2471_v19 = vld [vmem:[#allocation2] sm:$0xff] }
 0x7f3   : > { %2566 = vmatpush.bf16.msra.mxu0 %v4567_v7  ;;  %v4555_v24 = vld [vmem:[#allocation20 + $0x8] sm:$0xff]  ;;  %v4554_v15 = vld [vmem:[#allocation20] sm:$0xff]  ;;  %v2472_v20 = vld [vmem:[#allocation2 + $0x8] sm:$0xff] }
 0x7f4   : > { %2628 = vmatpush.bf16.msra.mxu1 %v4559_v54  ;;  %v4579_v16 = vld [vmem:[#allocation21 + $0x48] sm:$0xff]  ;;  %v4578_v18 = vld [vmem:[#allocation21 + $0x40] sm:$0xff]  ;;  %v4601_v12 = vld [vmem:[#allocation21 + $0xb8] sm:$0xff]  ;;  %v6391_v52 = vpack.c.bf16 %v2472_v20, %v2471_v19 }
 0x7f5   : > { %2768 = vmatpush.bf16.msra.mxu2 %v4583_v55  ;;  %v4571_v11 = vld [vmem:[#allocation20 + $0x48] sm:$0xff]  ;;  %v4570_v10 = vld [vmem:[#allocation20 + $0x40] sm:$0xff]  ;;  %v4593_v21 = vld [vmem:[#allocation20 + $0xb8] sm:$0xff] }
 0x7f6   : > { %2830 = vmatpush.bf16.msra.mxu3 %v4575_v56  ;;  %v4617_v22 = vld [vmem:[#allocation21 + $0xf8] sm:$0xff]  ;;  %v4600_v13 = vld [vmem:[#allocation21 + $0xb0] sm:$0xff]  ;;  %v4599_v14 = vld [vmem:[#allocation21 + $0xa8] sm:$0xff] }
 0x7f7   : > { %2567 = vmatpush.bf16.msra.mxu0 %v4566_v57  ;;  %v4609_v23 = vld [vmem:[#allocation20 + $0xf8] sm:$0xff]  ;;  %v4592_v26 = vld [vmem:[#allocation20 + $0xb0] sm:$0xff]  ;;  %v4591_v28 = vld [vmem:[#allocation20 + $0xa8] sm:$0xff] }
 0x7f8   : > { %2629 = vmatpush.bf16.msra.mxu1 %v4558_v58  ;;  %v6389_v25 = vld [vmem:[%s6695_s26] sm:$0xff]  ;;  %v4615_v29 = vld [vmem:[#allocation21 + $0xe8] sm:$0xff]  ;;  %v4598_v32 = vld [vmem:[#allocation21 + $0xa0] sm:$0xff] }
 0x7f9   : > { %2769 = vmatpush.bf16.msra.mxu2 %v4582_v59  ;;  %v4616_v53 = vld [vmem:[#allocation21 + $0xf0] sm:$0xff]  ;;  %v4607_v30 = vld [vmem:[#allocation20 + $0xe8] sm:$0xff]  ;;  %v4590_v33 = vld [vmem:[#allocation20 + $0xa0] sm:$0xff] }
 0x7fa   : > { %2831 = vmatpush.bf16.msra.mxu3 %v4574_v60  ;;  %v4608_v27 = vld [vmem:[#allocation20 + $0xf0] sm:$0xff]  ;;  %v4614_v31 = vld [vmem:[#allocation21 + $0xe0] sm:$0xff]  ;;  %v4597_v8 = vld [vmem:[#allocation21 + $0x98] sm:$0xff] }
 0x7fb   : > { %2568 = vmatpush.bf16.msra.mxu0 %v4565_v61  ;;  %v4606_v36 = vld [vmem:[#allocation20 + $0xe0] sm:$0xff]  ;;  %v4589_v34 = vld [vmem:[#allocation20 + $0x98] sm:$0xff]  ;;  %v4596_v35 = vld [vmem:[#allocation21 + $0x90] sm:$0xff] }
 0x7fc   : > { %2630 = vmatpush.bf16.msra.mxu1 %v4557_v62  ;;  %v4613_v37 = vld [vmem:[#allocation21 + $0xd8] sm:$0xff]  ;;  %v4588_v38 = vld [vmem:[#allocation20 + $0x90] sm:$0xff]  ;;  %v4595_v41 = vld [vmem:[#allocation21 + $0x88] sm:$0xff] }
 0x7fd   : > { %2770 = vmatpush.bf16.msra.mxu2 %v4581_v63  ;;  %v4605_v9 = vld [vmem:[#allocation20 + $0xd8] sm:$0xff]  ;;  %v4612_v39 = vld [vmem:[#allocation21 + $0xd0] sm:$0xff]  ;;  %v4587_v42 = vld [vmem:[#allocation20 + $0x88] sm:$0xff] }
 0x7fe   : > { %2832 = vmatpush.bf16.msra.mxu3 %v4573_v0  ;;  %v4604_v40 = vld [vmem:[#allocation20 + $0xd0] sm:$0xff]  ;;  %v4611_v43 = vld [vmem:[#allocation21 + $0xc8] sm:$0xff]  ;;  %v4594_v45 = vld [vmem:[#allocation21 + $0x80] sm:$0xff] }
 0x7ff   : > { %2569 = vmatpush.bf16.msra.mxu0 %v4564_v1  ;;  %v4603_v44 = vld [vmem:[#allocation20 + $0xc8] sm:$0xff]  ;;  %v4586_v46 = vld [vmem:[#allocation20 + $0x80] sm:$0xff]  ;;  %v4874_v5 = vld [vmem:[%s6696_s10] ss:$0 sm:$0xff] }
 0x800   : > { %2631 = vmatpush.bf16.msra.mxu1 %v4556_v2  ;;  %v4610_v47 = vld [vmem:[#allocation21 + $0xc0] sm:$0xff]  ;;  %v4875_v54 = vld [vmem:[%s6696_s10 + $0x1] ss:$0 sm:$0xff] }
 0x801   : > { %2771 = vmatpush.bf16.msra.mxu2 %v4580_v3  ;;  %v4602_v48 = vld [vmem:[#allocation20 + $0xc0] sm:$0xff] }
 0x802   : > { %2833 = vmatpush.bf16.msra.mxu3 %v4572_v4 }
 0x803   : > { %2570 = vmatpush.bf16.msra.mxu0 %v4563_v6 }
 0x804   : > { %2632 = vmatpush.bf16.msra.mxu1 %v4555_v24 }
 0x805   : > { %2772 = vmatpush.bf16.msra.mxu2 %v4579_v16 }
 0x806   : > { %2834 = vmatpush.bf16.msra.mxu3 %v4571_v11 }
 0x807   : > { %2571 = vmatpush.bf16.msra.mxu0 %v4562_v17 }
 0x808   : > { %2633 = vmatpush.bf16.msra.mxu1 %v4554_v15 }
 0x809   : > { %2773 = vmatpush.bf16.msra.mxu2 %v4578_v18 }
 0x80a   : > { %2835 = vmatpush.bf16.msra.mxu3 %v4570_v10  ;;  %2572 = vmatmul.bf16.vlgmr.msra.gmra.mxu0 %v6389_v25 }
 0x80b   : > { %2969 = vmatpush.bf16.msrb.mxu0 %v4601_v12  ;;  %2634 = vmatmul.bf16.vlgmr.msra.gmra.mxu1 %v6391_v52 }
 0x80c   : > { %3031 = vmatpush.bf16.msrb.mxu1 %v4593_v21  ;;  %2774 = vmatmul.bf16.vlgmr.msra.gmra.mxu2 %v6389_v25 }
 0x80d   : > { %3136 = vmatpush.bf16.msrb.mxu2 %v4617_v22  ;;  %2836 = vmatmul.bf16.vlgmr.msra.gmra.mxu3 %v6391_v52 }
 0x80e   : > { %3198 = vmatpush.bf16.msrb.mxu3 %v4609_v23 }
 0x80f   : > { %2970 = vmatpush.bf16.msrb.mxu0 %v4600_v13 }
 0x810   : > { %3032 = vmatpush.bf16.msrb.mxu1 %v4592_v26 }
 0x811   : > { %3137 = vmatpush.bf16.msrb.mxu2 %v4616_v53  ;;  %v4876_v53 = vld [vmem:[%s6696_s10 + $0x2] ss:$0 sm:$0xff] }
 0x812   : > { %3199 = vmatpush.bf16.msrb.mxu3 %v4608_v27 }
 0x813   : > { %2971 = vmatpush.bf16.msrb.mxu0 %v4599_v14 }
 0x814   : > { %3033 = vmatpush.bf16.msrb.mxu1 %v4591_v28 }
 0x815   : > { %3138 = vmatpush.bf16.msrb.mxu2 %v4615_v29 }
 0x816   : > { %3200 = vmatpush.bf16.msrb.mxu3 %v4607_v30 }
 0x817   : > { %2972 = vmatpush.bf16.msrb.mxu0 %v4598_v32 }
 0x818   : > { %3034 = vmatpush.bf16.msrb.mxu1 %v4590_v33 }
 0x819   : > { %3139 = vmatpush.bf16.msrb.mxu2 %v4614_v31 }
 0x81a   : > { %3201 = vmatpush.bf16.msrb.mxu3 %v4606_v36 }
 0x81b   : > { %2973 = vmatpush.bf16.msrb.mxu0 %v4597_v8 }
 0x81c   : > { %3035 = vmatpush.bf16.msrb.mxu1 %v4589_v34 }
 0x81d   : > { %3140 = vmatpush.bf16.msrb.mxu2 %v4613_v37 }
 0x81e   : > { %3202 = vmatpush.bf16.msrb.mxu3 %v4605_v9 }
 0x81f   : > { %2974 = vmatpush.bf16.msrb.mxu0 %v4596_v35 }
 0x820   : > { %3036 = vmatpush.bf16.msrb.mxu1 %v4588_v38 }
 0x821   : > { %3141 = vmatpush.bf16.msrb.mxu2 %v4612_v39 }
 0x822   : > { %3203 = vmatpush.bf16.msrb.mxu3 %v4604_v40 }
 0x823   : > { %2975 = vmatpush.bf16.msrb.mxu0 %v4595_v41  ;;  %v4877_v41 = vld [vmem:[%s6696_s10 + $0x3] ss:$0 sm:$0xff] }
 0x824   : > { %3037 = vmatpush.bf16.msrb.mxu1 %v4587_v42 }
 0x825   : > { %3142 = vmatpush.bf16.msrb.mxu2 %v4611_v43 }
 0x826   : > { %3204 = vmatpush.bf16.msrb.mxu3 %v4603_v44 }
 0x827   : > { %2976 = vmatpush.bf16.msrb.mxu0 %v4594_v45 }
 0x828   : > { %3038 = vmatpush.bf16.msrb.mxu1 %v4586_v46 }
 0x829   : > { %3143 = vmatpush.bf16.msrb.mxu2 %v4610_v47 }
 0x82a   : > { %3205 = vmatpush.bf16.msrb.mxu3 %v4602_v48  ;;  %2977 = vmatmul.bf16.vlgmr.msrb.gmra.mxu0 %v6389_v25 }
 0x82b   : > { %3039 = vmatmul.bf16.vlgmr.msrb.gmra.mxu1 %v6391_v52 }
 0x82c   : > { %3144 = vmatmul.bf16.vlgmr.msrb.gmra.mxu2 %v6389_v25 }
 0x82d   : > { %3206 = vmatmul.bf16.vlgmr.msrb.gmra.mxu3 %v6391_v52 }
 0x887   : > { %v2573_v49 = vpop.f32.mrf.mxu0 }
 0x888   : > { %v2635_v50 = vpop.f32.mrf.mxu1 }
 0x889   : > { %v2636_v51 = vadd.f32 %v2635_v50, %v2573_v49 }
 0x88b   : > { %v2644_v7 = vadd.f32 %v4874_v5, %v2636_v51 }
 0x88d   : > { %v4234_v55 = vmul.f32 -1.442695, %v2644_v7 }
 0x88f   : > { %v2775_v56 = vpop.f32.mrf.mxu2  ;;  %4878 = vpow2.f32 %v4234_v55  ;;  %v2575_v60 = vpop.f32.mrf.mxu0 }
 0x890   : > { %v2837_v57 = vpop.f32.mrf.mxu3  ;;  %v2637_v61 = vpop.f32.mrf.mxu1 }
 0x891   : > { %v2838_v58 = vadd.f32 %v2837_v57, %v2775_v56  ;;  %v2638_v62 = vadd.f32 %v2637_v61, %v2575_v60  ;;  %v2476_v57 = vld [vmem:[%s6116_s7] sm:$0xff] }
 0x893   : > { %v2847_v59 = vadd.f32 %v4875_v54, %v2838_v58  ;;  %v2645_v0 = vadd.f32 %v4874_v5, %v2638_v62 }
 0x895   : > { %v4301_v63 = vmul.f32 -1.442695, %v2847_v59  ;;  %v4879_v1 = vpop.eup %4878  ;;  %v4235_v2 = vmul.f32 -1.442695, %v2645_v0 }
 0x896   : > { %v2652_v6 = vadd.f32 1.0, %v4879_v1 }
 0x897   : > { %4880 = vpow2.f32 %v4301_v63  ;;  %v2777_v3 = vpop.f32.mrf.mxu2 }
 0x898   : > { %v2839_v4 = vpop.f32.mrf.mxu3  ;;  %4882 = vpow2.f32 %v4235_v2  ;;  %vm2659_vm15 = vweird.f32 %v2652_v6  ;;  %v2665_v27 = vand.u32 2147483648, %v2652_v6  ;;  %v2663_v31 = vand.u32 2147483647, %v2652_v6 }
 0x899   : > { %v2840_v24 = vadd.f32 %v2839_v4, %v2777_v3  ;;  %4884 = vrcp.f32 %v2652_v6 }
 0x89a   : > { %v2666_v39 = vor.u32 1.1754944e-38, %v2665_v27  ;;  %vm6435_vm5 = vcmp.eq.f32.partialorder %v2663_v31, 8.507059e+37 }
 0x89b   : > { %v2848_v16 = vadd.f32 %v4875_v54, %v2840_v24 }
 0x89d   : > { %v4881_v11 = vpop.eup %4880  ;;  %v4302_v17 = vmul.f32 -1.442695, %v2848_v16 }
 0x89e   : > { %v2855_v15 = vadd.f32 1.0, %v4881_v11  ;;  %v4883_v18 = vpop.eup %4882 }
 0x89f   : > { %4886 = vpow2.f32 %v4302_v17  ;;  %v4885_v10 = vpop.eup %4884  ;;  %v6407_v19 = vadd.f32 1.0, %v4883_v18 }
 0x8a0   : > { %4888 = vrcp.f32 %v2855_v15  ;;  %v2655_v20 = vmul.f32 %v4885_v10, %v2652_v6  ;;  %vm2862_vm0 = vweird.f32 %v2855_v15  ;;  %vm2660_vm1 = vweird.f32 %v4885_v10 }
 0x8a1   : > { %4890 = vrcp.f32 %v6407_v19  ;;  %v2868_v29 = vand.u32 2147483648, %v2855_v15  ;;  %v2866_v36 = vand.u32 2147483647, %v2855_v15  ;;  %vm6421_vm3 = vmor %vm2659_vm15, %vm2660_vm1  ;;  %vm2674_vm7 = vweird.f32 %v6407_v19 }
 0x8a2   : > { %v2656_v12 = vsub.f32 1.0, %v2655_v20  ;;  %v2678_v54 = vand.u32 2147483647, %v6407_v19  ;;  %v2680_v62 = vand.u32 2147483648, %v6407_v19 }
 0x8a3   : > { %v2869_v38 = vor.u32 1.1754944e-38, %v2868_v29  ;;  %vm6439_vm6 = vcmp.eq.f32.partialorder %v2866_v36, 8.507059e+37 }
 0x8a4   : > { %v2657_v25 = vmul.f32 %v4885_v10, %v2656_v12  ;;  %vm2679_vm13 = vcmp.eq.f32.partialorder %v2678_v54, 8.507059e+37  ;;  %v2681_v18 = vor.u32 1.1754944e-38, %v2680_v62 }
 0x8a5   : > { %v4887_v21 = vpop.eup %4886 }
 0x8a6   : > { %v4889_v22 = vpop.eup %4888  ;;  %v6410_v23 = vadd.f32 1.0, %v4887_v21  ;;  %v2658_v33 = vadd.f32 %v4885_v10, %v2657_v25 }
 0x8a7   : > { %v2858_v52 = vmul.f32 %v4889_v22, %v2855_v15  ;;  %v2978_v13 = vpop.f32.mrf.mxu0  ;;  %v6416_v14 = vpop.eup %4890  ;;  %vm2863_vm2 = vweird.f32 %v4889_v22 }
 0x8a8   : > { %v3040_v26 = vpop.f32.mrf.mxu1  ;;  %4892 = vrcp.f32 %v6410_v23  ;;  %v2670_v32 = vmul.f32 %v6416_v14, %v6407_v19  ;;  %vm6426_vm4 = vmor %vm2862_vm0, %vm2863_vm2  ;;  %v2662_v43 = vsel %vm6421_vm3, %v4885_v10, %v2658_v33  ;;  %vm2675_vm8 = vweird.f32 %v6416_v14 }
 0x8a9   : > { %v2859_v28 = vsub.f32 1.0, %v2858_v52  ;;  %v3041_v30 = vadd.f32 %v3040_v26, %v2978_v13  ;;  %v2667_v58 = vsel %vm6435_vm5, %v2666_v39, %v2662_v43  ;;  %v2883_v61 = vand.u32 2147483648, %v6410_v23  ;;  %vm6463_vm10 = vmor %vm2674_vm7, %vm2675_vm8 }
 0x8aa   : > { %v2671_v35 = vsub.f32 1.0, %v2670_v32  ;;  %v2881_v63 = vand.u32 2147483647, %v6410_v23  ;;  %vm2877_vm11 = vweird.f32 %v6410_v23 }
 0x8ab   : > { %v2860_v8 = vmul.f32 %v4889_v22, %v2859_v28  ;;  %v3050_v37 = vadd.f32 %v4876_v53, %v3041_v30  ;;  %v2884_v17 = vor.u32 1.1754944e-38, %v2883_v61 }
 0x8ac   : > { %v2672_v51 = vmul.f32 %v6416_v14, %v2671_v35  ;;  %vm2882_vm14 = vcmp.eq.f32.partialorder %v2881_v63, 8.507059e+37 }
 0x8ad   : > { %v2861_v40 = vadd.f32 %v4889_v22, %v2860_v8  ;;  %4894 = vtanh.f32 %v3050_v37 }
 0x8ae   : > { %v4893_v42 = vpop.eup %4892  ;;  %v2673_v4 = vadd.f32 %v6416_v14, %v2672_v51 }
 0x8af   : > { %v3145_v46 = vpop.f32.mrf.mxu2  ;;  %v2873_v48 = vmul.f32 %v4893_v42, %v6410_v23  ;;  %v2865_v5 = vsel %vm6426_vm4, %v4889_v22, %v2861_v40  ;;  %v2980_v50 = vpop.f32.mrf.mxu0  ;;  %vm2878_vm9 = vweird.f32 %v4893_v42  ;;  %v2477_v22 = vld [vmem:[%s6116_s7 + $0x8] sm:$0xff] }
 0x8b0   : > { %v3207_v47 = vpop.f32.mrf.mxu3  ;;  %v3042_v7 = vpop.f32.mrf.mxu1  ;;  %v2870_v59 = vsel %vm6439_vm6, %v2869_v38, %v2865_v5  ;;  %vm2879_vm12 = vmor %vm2877_vm11, %vm2878_vm9  ;;  %v2677_v19 = vsel %vm6463_vm10, %v6416_v14, %v2673_v4 }
 0x8b1   : > { %v3208_v49 = vadd.f32 %v3207_v47, %v3145_v46  ;;  %v3043_v55 = vadd.f32 %v3042_v7, %v2980_v50  ;;  %v2874_v56 = vsub.f32 1.0, %v2873_v48  ;;  %v3257_v6 = vmul.f32 %v2870_v59, %v2476_v57 }
 0x8b2   : > { %v2682_v13 = vsel %vm2679_vm13, %v2681_v18, %v2677_v19 }
 0x8b3   : > { %v3217_v60 = vadd.f32 %v4877_v41, %v3208_v49  ;;  %v3051_v0 = vadd.f32 %v4876_v53, %v3043_v55  ;;  %v4895_v1 = vpop.eup %4894  ;;  %v2875_v2 = vmul.f32 %v4893_v42, %v2874_v56 }
 0x8b4   : > { %v3259_v24 = vmul.f32 %v4895_v1, %v2667_v58 }
 0x8b5   : > { %v4433_v3 = vmul.f32 -1.442695, %v3217_v60  ;;  %4896 = vtanh.f32 %v3051_v0  ;;  %v2876_v11 = vadd.f32 %v4893_v42, %v2875_v2 }
 0x8b6   : > { %v3261_v15 = vadd.f32 %v3259_v24, %v3257_v6 }
 0x8b7   : > { %4898 = vpow2.f32 %v4433_v3  ;;  %v3147_v10 = vpop.f32.mrf.mxu2  ;;  %v2880_v12 = vsel %vm2879_vm12, %v4893_v42, %v2876_v11 }
 0x8b8   : > { %v3209_v20 = vpop.f32.mrf.mxu3  ;;  %3271 = vst [vmem:[%s6133_s3] sm:$0xff] %v3261_v15  ;;  %v2885_v23 = vsel %vm2882_vm14, %v2884_v17, %v2880_v12 }
 0x8b9   : > { %v3210_v21 = vadd.f32 %v3209_v20, %v3147_v10  ;;  %v3258_v53 = vmul.f32 %v2885_v23, %v2477_v22 }
 0x8bb   : > { %v3218_v25 = vadd.f32 %v4877_v41, %v3210_v21  ;;  %v4897_v52 = vpop.eup %4896 }
 0x8bc   : > { %v3260_v27 = vmul.f32 %v4897_v52, %v2682_v13 }
 0x8bd   : > { %v4899_v26 = vpop.eup %4898  ;;  %v4434_v28 = vmul.f32 -1.442695, %v3218_v25 }
 0x8be   : > { %v3225_v29 = vadd.f32 1.0, %v4899_v26  ;;  %v3262_v30 = vadd.f32 %v3260_v27, %v3258_v53 }
 0x8bf   : > { %4900 = vpow2.f32 %v4434_v28 }
 0x8c0   : > { %4902 = vrcp.f32 %v3225_v29  ;;  %3272 = vst [vmem:[%s6133_s3 + $0x8] sm:$0xff] %v3262_v30  ;;  %v3238_v35 = vand.u32 2147483648, %v3225_v29  ;;  %vm3232_vm0 = vweird.f32 %v3225_v29  ;;  %v3236_v38 = vand.u32 2147483647, %v3225_v29 }
 0x8c2   : > { %v3239_v44 = vor.u32 1.1754944e-38, %v3238_v35  ;;  %vm3237_vm3 = vcmp.eq.f32.partialorder %v3236_v38, 8.507059e+37 }
 0x8c5   : > { %v4901_v14 = vpop.eup %4900 }
 0x8c6   : > { %v4903_v32 = vpop.eup %4902  ;;  %v3226_v33 = vadd.f32 1.0, %v4901_v14 }
 0x8c7   : > { %v3228_v31 = vmul.f32 %v4903_v32, %v3225_v29  ;;  %vm3233_vm15 = vweird.f32 %v4903_v32 }
 0x8c8   : > { %4904 = vrcp.f32 %v3226_v33  ;;  %vm3234_vm1 = vmor %vm3232_vm0, %vm3233_vm15  ;;  %v3253_v40 = vand.u32 2147483648, %v3226_v33  ;;  %v3251_v43 = vand.u32 2147483647, %v3226_v33  ;;  %vm3247_vm4 = vweird.f32 %v3226_v33 }
 0x8c9   : > { %v3229_v36 = vsub.f32 1.0, %v3228_v31  ;;  %4906 = vtanh.f32 %v3261_v15 }
 0x8ca   : > { %4908 = vtanh.f32 %v3262_v30  ;;  %v3254_v47 = vor.u32 1.1754944e-38, %v3253_v40  ;;  %vm3252_vm6 = vcmp.eq.f32.partialorder %v3251_v43, 8.507059e+37 }
 0x8cb   : > { %v3230_v8 = vmul.f32 %v4903_v32, %v3229_v36 }
 0x8cd   : > { %v3231_v37 = vadd.f32 %v4903_v32, %v3230_v8 }
 0x8ce   : > { %v4905_v34 = vpop.eup %4904 }
 0x8cf   : > { %v3243_v9 = vmul.f32 %v4905_v34, %v3226_v33  ;;  %v3235_v41 = vsel %vm3234_vm1, %v4903_v32, %v3231_v37  ;;  %vm3248_vm2 = vweird.f32 %v4905_v34  ;;  %v4907_v48 = vpop.eup %4906 }
 0x8d0   : > { %v3240_v46 = vsel %vm3237_vm3, %v3239_v44, %v3235_v41  ;;  %vm3249_vm5 = vmor %vm3247_vm4, %vm3248_vm2  ;;  %v4909_v49 = vpop.eup %4908 }
 0x8d1   : > { %v3244_v39 = vsub.f32 1.0, %v3243_v9  ;;  %v3265_v51 = vmul.f32 %v4907_v48, %v3240_v46 }
 0x8d3   : > { %v3245_v42 = vmul.f32 %v4905_v34, %v3244_v39 }
 0x8d5   : > { %v3246_v45 = vadd.f32 %v4905_v34, %v3245_v42 }
 0x8d7   : > { %v3250_v5 = vsel %vm3249_vm5, %v4905_v34, %v3246_v45 }
 0x8d8   : > { %v3255_v50 = vsel %vm3252_vm6, %v3254_v47, %v3250_v5 }
 0x8d9   : > { %v3266_v7 = vmul.f32 %v4909_v49, %v3255_v50 }
 0x8db   : > { %v4623_v54 = vpack.c.bf16 %v3266_v7, %v3265_v51 }
 0x8dd   : > { %4624 = vst [vmem:[%s1219_s30] sm:$0xff] %v4623_v54  }
 0x8de PF: > { %s6707_s7 = sld [smem:[#allocation48_spill]]  ;;  %s3291_s28 = sshll.u32 %s1219_s30, 4  ;;  %s3292_s28 = int_to_ptr.vmem [resolvable:$true] %s3291_s28 }
 0x8df   : > { %s6708_s14 = sld [smem:[#allocation62_spill]] }
 0x8e0   : > { %s6710_s12 = sld [smem:[#allocation85_spill]] }
 0x8e4   : > { %s4618_s13 = sshll.u32 %s6707_s7, 3 }
 0x8e5   : > { %s3274_s0 = scalar_lea.sflag [#allocation5], %s6708_s14 }
 0x8e6   : > { %s3290_s19 = scalar_lea.hbm %s6710_s12, %s4618_s13  ;;  %s5380_s6 = scalar_lea.hbm %s6710_s12, 16 }
 0x8e7   : > { %s3293_s29 = sshll.u32 %s3290_s19, 4  ;;  %s3294_s29 = int_to_ptr.hbm [resolvable:$true] %s3293_s29 }
 0x8e8   : > { %s5374_s16 = sshra.s32 %s3294_s29, 4  ;;  %s5375_s16 = int_to_ptr.hbm [resolvable:$true] %s5374_s16 }
 0x8e9   : > { %s5376_s8 = scalar_lea.hbm %s5375_s16, 8  ;;  %p5381_p12 = scmp.lt.s32.totalorder %s5375_s16, %s6710_s12 }
 0x8ea   : > { %p5377_p11 = scmp.ne.s32.totalorder %s5375_s16, %s5376_s8  ;;  %p5382_p13 = scmp.lt.s32.totalorder %s5380_s6, %s5376_s8 }
 0x8ec   : > { %p5378_p4 = pnand %p5377_p11, %p5816_p3  ;;  %p5383_p0 = por %p5382_p13, %p5381_p12 }
 0x8ee   : > { %p5379_p10 = pneg %p5378_p4 }
 0x8f0   : > { %p5384_p7 = pnand %p5383_p0, %p5379_p10 }
 0x8f2   : > { %5387 = shalt.err (!%p5384_p7)
}
 0x8f3   : > { %s5582_s21 = smov 64   ;;  %s5583_s30 = smov 4  }
 0x8f4   : > { %4663 = dma.vmem_to_hbm [thread:$0]  (%p5816_p3), %s3292_s28, 128, %s3294_s29, %s3274_s0, %s5582_s21, %s5582_s21, %s5583_s30  }
 0x8f5   : > { %s4619_s26 = sshll.u32 %s6707_s7, 4  ;;  %s3308_s18 = sshll.u32 %s6133_s3, 4  ;;  %s3309_s18 = int_to_ptr.vmem [resolvable:$true] %s3308_s18 }
 0x8f6   : > { %s6711_s23 = sld [smem:[#allocation86_spill]]  ;;  %s3279_s4 = scalar_lea.sflag [#allocation24], %s6708_s14 }
 0x8fc   : > { %s6712_s20 = smov %s6711_s23  ;;  %s3307_s1 = scalar_lea.hbm %s6711_s23, %s4619_s26 }
 0x8fd   : > { %s3310_s24 = sshll.u32 %s3307_s1, 4  ;;  %s5408_s7 = scalar_lea.hbm %s6712_s20, 32  ;;  %s3311_s24 = int_to_ptr.hbm [resolvable:$true] %s3310_s24 }
 0x8fe   : > { %s5402_s13 = sshra.s32 %s3311_s24, 4  ;;  %s5403_s13 = int_to_ptr.hbm [resolvable:$true] %s5402_s13 }
 0x8ff   : > { %s5404_s27 = scalar_lea.hbm %s5403_s13, 16  ;;  %p5409_p1 = scmp.lt.s32.totalorder %s5403_s13, %s6712_s20 }
 0x900   : > { %p5405_p2 = scmp.ne.s32.totalorder %s5403_s13, %s5404_s27  ;;  %p5410_p8 = scmp.lt.s32.totalorder %s5408_s7, %s5404_s27 }
 0x902   : > { %p5406_p5 = pnand %p5405_p2, %p5816_p3  ;;  %p5411_p11 = por %p5410_p8, %p5409_p1 }
 0x904   : > { %p5407_p6 = pneg %p5406_p5 }
 0x906   : > { %p5412_p4 = pnand %p5411_p11, %p5407_p6 }
 0x908   : > { %5415 = shalt.err (!%p5412_p4)
}
 0x909   : > { %s5584_s14 = smov 128   ;;  %s5585_s29 = smov 8  }
 0x90a   : > { %4664 = dma.vmem_to_hbm [thread:$0]  (%p5816_p3), %s3309_s18, 256, %s3311_s24, %s3279_s4, %s5584_s14, %s5584_s14, %s5585_s29  }
 0x90b PF: > { %s6713_s0 = sld [smem:[#allocation51_spill]] }
 0x90c   : > { %s6714_s16 = sld [smem:[#allocation44_spill]] }
 0x911   : > { %p4730_p10 = scmp.ge.s32.totalorder %s6713_s0, 2 }
 0x912   : > { %s3325_s17 = sand.u32 1, %s6714_s16  }
 0x913   : > { %p4715_p12 = pnand %p4730_p10, %p5828_p9  ;;  %s3326_s5 = scalar_lea.sflag [#allocation5], %s3325_s17 }
 0x915   : > { %p4716_p13 = pneg %p4715_p12 }
 0x917   : > { %5521 = dma.done.wait (%p4716_p13), %s3326_s5, 128  }
 0x918   : > { %5523 = vsyncadd (%p4716_p13), %s3326_s5, 4294967168  ;;  %s3336_s6 = scalar_lea.sflag [#allocation24], %s3325_s17 }
 0x919   : > { %5525 = dma.done.wait (%p4716_p13), %s3336_s6, 256  }
 0x91a   : > { %5527 = vsyncadd (%p4716_p13), %s3336_s6, 4294967040  ;;  %s46_s6 = sadd.s32 1, %s6713_s0   ;;  %s6716_s3 = sld [smem:[#allocation42_spill]] }
 0x91b   : > { %p43_p0 = scmp.ge.s32.totalorder %s46_s6, 6   ;;  %s6717_s28 = sld [smem:[#allocation43_spill]] }
 0x91c   : > { %s6718_s29 = sld [smem:[#allocation61_spill]] }
 0x91d   : > { %s6719_s30 = sld [smem:[#allocation45_spill]] }
 0x91e   : > { %s6720_s4 = sld [smem:[#allocation46_spill]] }
 0x91f   : > { %s6721_s0 = sld [smem:[#allocation60_spill]]  ;;  %45 = sbr.rel (!%p43_p0) target bundleno = 38 (0x26), region = 326 }
 0x920   : > { %s6722_s23 = sld [smem:[#allocation49_spill]] }
 0x921   : > { %s6723_s1 = sld [smem:[#allocation50_spill]] }
 0x922   : > { %s6724_s5 = sld [smem:[#allocation55_spill]] }
 0x923   : > { %s6725_s24 = sld [smem:[#allocation58_spill]] }
 0x924   :  { %3342 = vsyncpa [#allocation4], 1 }
 0x925   :  { %3344 = vsyncpa [#allocation4 + $0x1], 1 }
 0x926   :  { %3345 = vsyncpa [#allocation7], 1 }
 0x927   :  { %3347 = vsyncpa [#allocation7 + $0x1], 1 }
 0x928   :  { %3348 = vsyncpa [#allocation10], 1 }
 0x929   :  { %3349 = vsyncpa [#allocation5], 1 }
 0x92a   :  { %3351 = vsyncpa [#allocation5 + $0x1], 1 }
 0x92b   :  { %3352 = vsyncpa [#allocation24], 1 }
 0x92c   :  { %3354 = vsyncpa [#allocation24 + $0x1], 1 }

</bundles_post_ra>
